<compile_context>
chip_gen: v7x
topology: tpu7x:2x2x1
jax: 0.10.0
libtpu: 0.0.40
codegen_flags: <defaults>
</compile_context>

<pallas_src>
import numpy as np
import jax
import jax.numpy as jnp
from jax import lax
from jax.experimental import pallas as pl
from jax.experimental.pallas import tpu as pltpu

EPS = 1e-5


# ------------------------------ fused kernel ------------------------------- #

def _bottleneck_kernel(x_ref, shift_ref, pool_ref, bcast_ref,
                       w1_ref, b1_ref, w2_ref, b2_ref,
                       sew1_ref, seb1_ref, sew2_ref, seb2_ref,
                       w3_ref, b3_ref, o_ref):
    """Fully fused bottleneck for one lane-dense (C, B*HW) block.

    Per grid step the only HBM traffic is the (Cin, B*HW) input block and the
    (Cout, B*HW) output block; weights / shift matrices are VMEM-resident and
    every intermediate lives in vregs.
    """
    f32 = jnp.float32
    x0 = x_ref[...]                                              # (Cin, BL)

    # ---- conv1: 1x1 conv (BN scale folded into weights) + bias + ReLU ----
    y1 = jnp.dot(w1_ref[...], x0, preferred_element_type=f32)
    y1 = jnp.maximum(y1 + b1_ref[...], 0.0)                      # (Cmid, BL)

    # ---- conv2: grouped 3x3 conv (stride 1, pad 1) + BN + ReLU ----
    # Per tap: spatial shift + halo zero-mask as one matmul against a
    # precomputed 0/1 matrix (single 128-lane MXU tile), then the
    # block-diagonal channel-mixing tap weights.  No halo scratch, no relayouts.
    acc = jnp.zeros_like(y1)
    for t in range(9):                                           # unrolled at trace time
        patch = jnp.dot(y1, shift_ref[t], preferred_element_type=f32)    # (Cmid, BL)
        acc = acc + jnp.dot(w2_ref[t], patch, preferred_element_type=f32)
    y2 = jnp.maximum(acc + b2_ref[...], 0.0)                     # (Cmid, BL)

    # ---- SE, batched over the B samples of this block ----
    pooled = jnp.dot(y2, pool_ref[...], preferred_element_type=f32)      # (Cmid, B)
    z = jnp.maximum(jnp.dot(sew1_ref[...], pooled, preferred_element_type=f32)
                    + seb1_ref[...], 0.0)                                # (Cr, B)
    gate = jax.nn.sigmoid(jnp.dot(sew2_ref[...], z, preferred_element_type=f32)
                          + seb2_ref[...])                               # (Cmid, B)
    y2 = y2 * jnp.dot(gate, bcast_ref[...], preferred_element_type=f32)  # (Cmid, BL)

    # ---- conv3: 1x1 conv + BN, identity shortcut, final ReLU ----
    # TODO(synk): drop_path / downsample are None in this config (identity
    # shortcut; requires in_chs == out_chs and stride == 1, asserted in wrapper).
    y3 = jnp.dot(w3_ref[...], y2, preferred_element_type=f32) + b3_ref[...]
    o_ref[...] = jnp.maximum(y3 + x0, 0.0)


# -------------------------------- wrapper ---------------------------------- #

def _pick_block_batch(n, hw):
    """Smallest batch-per-step that divides n and yields a lane-dense
    (multiple-of-128) block of at most 512 lanes; falls back to 1."""
    for b in range(1, n + 1):
        if n % b == 0 and (b * hw) % 128 == 0 and b * hw <= 512:
            return b
    return 1


def _conv3x3_shift_matrices(h, w, b):
    """(9, BL, BL) 0/1 matrices: tap t routes source lane (h+dy, w+dx) of the
    same sample to destination lane (h, w); out-of-range taps stay zero, which
    implements the pad-1 halo."""
    hw, bl = h * w, b * h * w
    s = np.zeros((9, bl, bl), np.float32)
    for t in range(9):
        dy, dx = divmod(t, 3)
        dy, dx = dy - 1, dx - 1
        for bi in range(b):
            for hi in range(h):
                hs = hi + dy
                if hs < 0 or hs >= h:
                    continue
                for wi in range(w):
                    ws = wi + dx
                    if ws < 0 or ws >= w:
                        continue
                    s[t, bi * hw + hs * w + ws, bi * hw + hi * w + wi] = 1.0
    return s


def bottleneck_forward(x_nchw, p, block_batch=None):
    x = x_nchw.astype(jnp.float32)
    N, Cin, H, W = x.shape
    HW = H * W
    Cmid = p['w1t'].shape[0]
    Cout = p['w3t'].shape[0]
    Cr = p['se_w1t'].shape[0]
    if Cin != Cout:
        raise ValueError("identity shortcut requires in_chs == out_chs "
                         "(downsample projection not implemented)")

    B = block_batch if block_batch is not None else _pick_block_batch(N, HW)
    assert N % B == 0, (N, B)
    BL = B * HW
    grid = (N // B,)

    # channels-in-sublane / spatial-in-lane slab: (C, N*HW), lane = n*HW + h*W + w
    x_cl = x.reshape(N, Cin, HW).transpose(1, 0, 2).reshape(Cin, N * HW)

    # Trace-time constants: per-tap shift/halo matrices, SE pool / broadcast.
    shift = jnp.asarray(_conv3x3_shift_matrices(H, W, B))        # (9, BL, BL)
    samp = np.arange(BL) // HW
    pool_np = np.zeros((BL, B), np.float32)
    pool_np[np.arange(BL), samp] = 1.0 / HW
    bcast_np = np.zeros((B, BL), np.float32)
    bcast_np[samp, np.arange(BL)] = 1.0
    pool, bcast = jnp.asarray(pool_np), jnp.asarray(bcast_np)

    def resident(shape):
        zeros = (0,) * len(shape)
        # Constant index_map keeps these VMEM-resident across the grid.  At
        # production widths add pipeline_mode=pl.Buffered(1) (or pl.ANY + one
        # manual copy) so they are not double-buffered; negligible at Cmid=16.
        return pl.BlockSpec(shape, lambda g, _z=zeros: _z)

    out = pl.pallas_call(
        _bottleneck_kernel,
        out_shape=jax.ShapeDtypeStruct((Cout, N * HW), jnp.float32),
        grid=grid,
        in_specs=[
            pl.BlockSpec((Cin, BL), lambda g: (0, g)),           # x block (lane-dense)
            resident((9, BL, BL)),                               # conv2 shift/halo taps
            resident((BL, B)),                                   # SE pool matrix
            resident((B, BL)),                                   # SE gate broadcast
            resident((Cmid, Cin)), resident((Cmid, 1)),          # conv1 w (BN-folded), bias
            resident((9, Cmid, Cmid)), resident((Cmid, 1)),      # conv2 block-diag taps, bias
            resident((Cr, Cmid)), resident((Cr, 1)),             # SE fc1
            resident((Cmid, Cr)), resident((Cmid, 1)),           # SE fc2
            resident((Cout, Cmid)), resident((Cout, 1)),         # conv3 w (BN-folded), bias
        ],
        out_specs=pl.BlockSpec((Cout, BL), lambda g: (0, g)),
        compiler_params=pltpu.CompilerParams(
            dimension_semantics=("parallel",),
            vmem_limit_bytes=32 * 1024 * 1024),
    )(x_cl, shift, pool, bcast,
      p['w1t'], p['b1'],
      p['w2t_bd'], p['b2'],
      p['se_w1t'], p['se_b1t'], p['se_w2t'], p['se_b2t'],
      p['w3t'], p['b3'])

    return out.reshape(Cout, N, H, W).transpose(1, 0, 2, 3)       # back to NCHW


# ----------------------- parameters & pure-JAX reference ------------------- #

def make_params(key, in_chs, out_chs, bottleneck_ratio=1.0, group_width=8, se_ratio=0.25):
    bottleneck_chs = int(round(out_chs * bottleneck_ratio))
    assert bottleneck_chs % group_width == 0, (bottleneck_chs, group_width)
    groups = bottleneck_chs // group_width
    se_chs = int(round(in_chs * se_ratio))
    cg = bottleneck_chs // groups
    ks = jax.random.split(key, 10)

    def nrm(k, shape, scale=0.1):
        return (scale * jax.random.normal(k, shape)).astype(jnp.float32)

    def bn_params(k, c):
        k1, k2, k3, k4 = jax.random.split(k, 4)
        gamma = (1.0 + 0.1 * jax.random.normal(k1, (c,))).astype(jnp.float32)
        beta = (0.1 * jax.random.normal(k2, (c,))).astype(jnp.float32)
        mean = (0.1 * jax.random.normal(k3, (c,))).astype(jnp.float32)
        var = (1.0 + 0.1 * jax.random.uniform(k4, (c,))).astype(jnp.float32)
        return gamma, beta, mean, var

    conv1_w = nrm(ks[0], (1, 1, in_chs, bottleneck_chs))          # HWIO
    bn1 = bn_params(ks[1], bottleneck_chs)
    conv2_w = nrm(ks[2], (3, 3, cg, bottleneck_chs))              # grouped HWIO
    bn2 = bn_params(ks[3], bottleneck_chs)
    se_w1 = nrm(ks[4], (bottleneck_chs, se_chs))
    se_b1 = nrm(ks[5], (1, se_chs))
    se_w2 = nrm(ks[6], (se_chs, bottleneck_chs))
    se_b2 = nrm(ks[7], (1, bottleneck_chs))
    conv3_w = nrm(ks[8], (1, 1, bottleneck_chs, out_chs))
    bn3 = bn_params(ks[9], out_chs)

    def fold(bn):
        g, b, m, v = bn
        s = g / jnp.sqrt(v + EPS)
        return np.asarray(s, np.float32), np.asarray(b - m * s, np.float32)

    s1, b1 = fold(bn1)
    s2, b2 = fold(bn2)
    s3, b3 = fold(bn3)

    # Block-diagonal per-tap weights for the grouped 3x3 conv, transposed for
    # the channels-in-sublane layout, with the BN scale folded into the
    # output-channel rows.  NOTE: at production widths (Cmid >> 128) the
    # expansion should be capped at one 128-lane MXU tile per group block
    # instead of a full (Cmid, Cmid) matrix per tap.
    w2_np = np.asarray(conv2_w)
    bd_t = np.zeros((9, bottleneck_chs, bottleneck_chs), np.float32)   # (tap, cout, cin)
    for t in range(9):
        ky, kx = divmod(t, 3)
        for g in range(groups):
            blk = w2_np[ky, kx, :, g * cg:(g + 1) * cg]                 # (cin_grp, cout_grp)
            bd_t[t, g * cg:(g + 1) * cg, g * cg:(g + 1) * cg] = blk.T
    bd_t *= s2.reshape(1, -1, 1)

    w1t = np.asarray(conv1_w).reshape(in_chs, bottleneck_chs).T * s1[:, None]
    w3t = np.asarray(conv3_w).reshape(bottleneck_chs, out_chs).T * s3[:, None]

    kernel_params = dict(
        w1t=jnp.asarray(w1t), b1=jnp.asarray(b1.reshape(-1, 1)),
        w2t_bd=jnp.asarray(bd_t), b2=jnp.asarray(b2.reshape(-1, 1)),
        se_w1t=se_w1.T, se_b1t=se_b1.reshape(-1, 1),
        se_w2t=se_w2.T, se_b2t=se_b2.reshape(-1, 1),
        w3t=jnp.asarray(w3t), b3=jnp.asarray(b3.reshape(-1, 1)),
    )
    raw = dict(conv1_w=conv1_w, bn1=bn1, conv2_w=conv2_w, bn2=bn2,
               se_w1=se_w1, se_b1=se_b1, se_w2=se_w2, se_b2=se_b2,
               conv3_w=conv3_w, bn3=bn3, groups=groups)
    return kernel_params, raw


def reference_forward(x_nchw, raw):
    x = jnp.transpose(x_nchw, (0, 2, 3, 1)).astype(jnp.float32)

    def bn(y, prm):
        g, b, m, v = prm
        return (y - m) / jnp.sqrt(v + EPS) * g + b

    dn = ('NHWC', 'HWIO', 'NHWC')
    y = lax.conv_general_dilated(x, raw['conv1_w'], (1, 1), 'VALID', dimension_numbers=dn)
    y = jnp.maximum(bn(y, raw['bn1']), 0.0)
    y = lax.conv_general_dilated(y, raw['conv2_w'], (1, 1), ((1, 1), (1, 1)),
                                 dimension_numbers=dn, feature_group_count=raw['groups'])
    y = jnp.maximum(bn(y, raw['bn2']), 0.0)
    pooled = jnp.mean(y, axis=(1, 2), keepdims=True)
    z = jnp.maximum(jnp.einsum('nhwc,cd->nhwd', pooled, raw['se_w1']) + raw['se_b1'][0], 0.0)
    gate = jax.nn.sigmoid(jnp.einsum('nhwc,cd->nhwd', z, raw['se_w2']) + raw['se_b2'][0])
    y = y * gate
    y = lax.conv_general_dilated(y, raw['conv3_w'], (1, 1), 'VALID', dimension_numbers=dn)
    y = bn(y, raw['bn3'])
    y = jnp.maximum(y + x, 0.0)
    return jnp.transpose(y, (0, 3, 1, 2))


# ---------------------------------- main ----------------------------------- #

if __name__ == "__main__":
    key = jax.random.PRNGKey(0)
    k_x, k_p = jax.random.split(key)

    # in_chs == out_chs == 16, H = W = 8, group_width=8 -> groups=2, se_chs=4.
    # N=4 with B=2 samples per grid step -> lane-dense (16, 128) blocks, grid=(2,).
    N, C, H, W = 4, 16, 8, 8
    x = jax.random.normal(k_x, (N, C, H, W), jnp.float32)
    params, raw = make_params(k_p, in_chs=C, out_chs=C, group_width=8, se_ratio=0.25)

    out = jax.jit(bottleneck_forward)(x, params)
    out = jax.block_until_ready(out)

    ref = reference_forward(x, raw)
    assert out.shape == (N, C, H, W), out.shape
    if not jnp.allclose(out, ref, rtol=1e-4, atol=1e-4):
        raise AssertionError(
            f"mismatch: max abs err = {float(jnp.max(jnp.abs(out - ref)))}")
    print("KERNEL_OK")
</pallas_src>

<mosaic_0001>
module attributes {stable_mosaic.version = 11 : i64} {
  func.func @_bottleneck_kernel(%arg0: i32, %arg1: memref<16x128xf32, #tpu.memory_space<vmem>>, %arg2: memref<9x128x128xf32, #tpu.memory_space<vmem>>, %arg3: memref<128x2xf32, #tpu.memory_space<vmem>>, %arg4: memref<2x128xf32, #tpu.memory_space<vmem>>, %arg5: memref<16x16xf32, #tpu.memory_space<vmem>>, %arg6: memref<16x1xf32, #tpu.memory_space<vmem>>, %arg7: memref<9x16x16xf32, #tpu.memory_space<vmem>>, %arg8: memref<16x1xf32, #tpu.memory_space<vmem>>, %arg9: memref<4x16xf32, #tpu.memory_space<vmem>>, %arg10: memref<4x1xf32, #tpu.memory_space<vmem>>, %arg11: memref<16x4xf32, #tpu.memory_space<vmem>>, %arg12: memref<16x1xf32, #tpu.memory_space<vmem>>, %arg13: memref<16x16xf32, #tpu.memory_space<vmem>>, %arg14: memref<16x1xf32, #tpu.memory_space<vmem>>, %arg15: memref<16x128xf32, #tpu.memory_space<vmem>>) attributes {dimension_semantics = [#tpu.dimension_semantics<parallel>], iteration_bounds = array<i64: 2>, scalar_prefetch = 0 : i64, scratch_operands = 0 : i64, tpu.core_type = #tpu.core_type<tc>, window_params = [{transform_indices = @transform_0, window_bounds = array<i64: 16, 128>}, {pipeline_mode = #tpu.pipeline_mode<synchronous>, transform_indices = @transform_1, window_bounds = array<i64: 9, 128, 128>}, {pipeline_mode = #tpu.pipeline_mode<synchronous>, transform_indices = @transform_2, window_bounds = array<i64: 128, 2>}, {pipeline_mode = #tpu.pipeline_mode<synchronous>, transform_indices = @transform_3, window_bounds = array<i64: 2, 128>}, {pipeline_mode = #tpu.pipeline_mode<synchronous>, transform_indices = @transform_4, window_bounds = array<i64: 16, 16>}, {pipeline_mode = #tpu.pipeline_mode<synchronous>, transform_indices = @transform_5, window_bounds = array<i64: 16, 1>}, {pipeline_mode = #tpu.pipeline_mode<synchronous>, transform_indices = @transform_6, window_bounds = array<i64: 9, 16, 16>}, {pipeline_mode = #tpu.pipeline_mode<synchronous>, transform_indices = @transform_7, window_bounds = array<i64: 16, 1>}, {pipeline_mode = #tpu.pipeline_mode<synchronous>, transform_indices = @transform_8, window_bounds = array<i64: 4, 16>}, {pipeline_mode = #tpu.pipeline_mode<synchronous>, transform_indices = @transform_9, window_bounds = array<i64: 4, 1>}, {pipeline_mode = #tpu.pipeline_mode<synchronous>, transform_indices = @transform_10, window_bounds = array<i64: 16, 4>}, {pipeline_mode = #tpu.pipeline_mode<synchronous>, transform_indices = @transform_11, window_bounds = array<i64: 16, 1>}, {pipeline_mode = #tpu.pipeline_mode<synchronous>, transform_indices = @transform_12, window_bounds = array<i64: 16, 16>}, {pipeline_mode = #tpu.pipeline_mode<synchronous>, transform_indices = @transform_13, window_bounds = array<i64: 16, 1>}, {transform_indices = @transform_14, window_bounds = array<i64: 16, 128>}]} {
    %c0 = arith.constant 0 : index
    %c0_0 = arith.constant 0 : index
    %0 = vector.load %arg1[%c0, %c0_0] : memref<16x128xf32, #tpu.memory_space<vmem>>, vector<16x128xf32>
    %c0_1 = arith.constant 0 : index
    %c0_2 = arith.constant 0 : index
    %1 = vector.load %arg5[%c0_1, %c0_2] : memref<16x16xf32, #tpu.memory_space<vmem>>, vector<16x16xf32>
    %cst = arith.constant dense<0.000000e+00> : vector<16x128xf32>
    %2 = tpu.matmul %1, %0, %cst {dimension_numbers = #tpu.dot_dimension_numbers<[1], [0], [0], [1], [0, 0, 1, 1], [], []>} : vector<16x16xf32>, vector<16x128xf32>, vector<16x128xf32> -> vector<16x128xf32>
    %c0_3 = arith.constant 0 : index
    %c0_4 = arith.constant 0 : index
    %3 = vector.load %arg6[%c0_3, %c0_4] : memref<16x1xf32, #tpu.memory_space<vmem>>, vector<16x1xf32>
    %4 = vector.broadcast %3 : vector<16x1xf32> to vector<16x128xf32>
    %5 = arith.addf %2, %4 : vector<16x128xf32>
    %cst_5 = arith.constant 0.000000e+00 : f32
    %6 = vector.broadcast %cst_5 : f32 to vector<16x128xf32>
    %7 = arith.maximumf %5, %6 : vector<16x128xf32>
    %cst_6 = arith.constant 0.000000e+00 : f32
    %8 = vector.broadcast %cst_6 : f32 to vector<16x128xf32>
    %c0_7 = arith.constant 0 : index
    %c0_8 = arith.constant 0 : index
    %c0_9 = arith.constant 0 : index
    %9 = vector.load %arg2[%c0_7, %c0_8, %c0_9] : memref<9x128x128xf32, #tpu.memory_space<vmem>>, vector<1x128x128xf32>
    %10 = vector.shape_cast %9 : vector<1x128x128xf32> to vector<128x128xf32>
    %cst_10 = arith.constant dense<0.000000e+00> : vector<16x128xf32>
    %11 = tpu.matmul %7, %10, %cst_10 {dimension_numbers = #tpu.dot_dimension_numbers<[1], [0], [0], [1], [0, 0, 1, 1], [], []>} : vector<16x128xf32>, vector<128x128xf32>, vector<16x128xf32> -> vector<16x128xf32>
    %c0_11 = arith.constant 0 : index
    %c0_12 = arith.constant 0 : index
    %c0_13 = arith.constant 0 : index
    %12 = vector.load %arg7[%c0_11, %c0_12, %c0_13] : memref<9x16x16xf32, #tpu.memory_space<vmem>>, vector<1x16x16xf32>
    %13 = vector.shape_cast %12 : vector<1x16x16xf32> to vector<16x16xf32>
    %cst_14 = arith.constant dense<0.000000e+00> : vector<16x128xf32>
    %14 = tpu.matmul %13, %11, %cst_14 {dimension_numbers = #tpu.dot_dimension_numbers<[1], [0], [0], [1], [0, 0, 1, 1], [], []>} : vector<16x16xf32>, vector<16x128xf32>, vector<16x128xf32> -> vector<16x128xf32>
    %15 = arith.addf %8, %14 : vector<16x128xf32>
    %c1 = arith.constant 1 : index
    %c0_15 = arith.constant 0 : index
    %c0_16 = arith.constant 0 : index
    %16 = vector.load %arg2[%c1, %c0_15, %c0_16] : memref<9x128x128xf32, #tpu.memory_space<vmem>>, vector<1x128x128xf32>
    %17 = vector.shape_cast %16 : vector<1x128x128xf32> to vector<128x128xf32>
    %cst_17 = arith.constant dense<0.000000e+00> : vector<16x128xf32>
    %18 = tpu.matmul %7, %17, %cst_17 {dimension_numbers = #tpu.dot_dimension_numbers<[1], [0], [0], [1], [0, 0, 1, 1], [], []>} : vector<16x128xf32>, vector<128x128xf32>, vector<16x128xf32> -> vector<16x128xf32>
    %c1_18 = arith.constant 1 : index
    %c0_19 = arith.constant 0 : index
    %c0_20 = arith.constant 0 : index
    %19 = vector.load %arg7[%c1_18, %c0_19, %c0_20] : memref<9x16x16xf32, #tpu.memory_space<vmem>>, vector<1x16x16xf32>
    %20 = vector.shape_cast %19 : vector<1x16x16xf32> to vector<16x16xf32>
    %cst_21 = arith.constant dense<0.000000e+00> : vector<16x128xf32>
    %21 = tpu.matmul %20, %18, %cst_21 {dimension_numbers = #tpu.dot_dimension_numbers<[1], [0], [0], [1], [0, 0, 1, 1], [], []>} : vector<16x16xf32>, vector<16x128xf32>, vector<16x128xf32> -> vector<16x128xf32>
    %22 = arith.addf %15, %21 : vector<16x128xf32>
    %c2 = arith.constant 2 : index
    %c0_22 = arith.constant 0 : index
    %c0_23 = arith.constant 0 : index
    %23 = vector.load %arg2[%c2, %c0_22, %c0_23] : memref<9x128x128xf32, #tpu.memory_space<vmem>>, vector<1x128x128xf32>
    %24 = vector.shape_cast %23 : vector<1x128x128xf32> to vector<128x128xf32>
    %cst_24 = arith.constant dense<0.000000e+00> : vector<16x128xf32>
    %25 = tpu.matmul %7, %24, %cst_24 {dimension_numbers = #tpu.dot_dimension_numbers<[1], [0], [0], [1], [0, 0, 1, 1], [], []>} : vector<16x128xf32>, vector<128x128xf32>, vector<16x128xf32> -> vector<16x128xf32>
    %c2_25 = arith.constant 2 : index
    %c0_26 = arith.constant 0 : index
    %c0_27 = arith.constant 0 : index
    %26 = vector.load %arg7[%c2_25, %c0_26, %c0_27] : memref<9x16x16xf32, #tpu.memory_space<vmem>>, vector<1x16x16xf32>
    %27 = vector.shape_cast %26 : vector<1x16x16xf32> to vector<16x16xf32>
    %cst_28 = arith.constant dense<0.000000e+00> : vector<16x128xf32>
    %28 = tpu.matmul %27, %25, %cst_28 {dimension_numbers = #tpu.dot_dimension_numbers<[1], [0], [0], [1], [0, 0, 1, 1], [], []>} : vector<16x16xf32>, vector<16x128xf32>, vector<16x128xf32> -> vector<16x128xf32>
    %29 = arith.addf %22, %28 : vector<16x128xf32>
    %c3 = arith.constant 3 : index
    %c0_29 = arith.constant 0 : index
    %c0_30 = arith.constant 0 : index
    %30 = vector.load %arg2[%c3, %c0_29, %c0_30] : memref<9x128x128xf32, #tpu.memory_space<vmem>>, vector<1x128x128xf32>
    %31 = vector.shape_cast %30 : vector<1x128x128xf32> to vector<128x128xf32>
    %cst_31 = arith.constant dense<0.000000e+00> : vector<16x128xf32>
    %32 = tpu.matmul %7, %31, %cst_31 {dimension_numbers = #tpu.dot_dimension_numbers<[1], [0], [0], [1], [0, 0, 1, 1], [], []>} : vector<16x128xf32>, vector<128x128xf32>, vector<16x128xf32> -> vector<16x128xf32>
    %c3_32 = arith.constant 3 : index
    %c0_33 = arith.constant 0 : index
    %c0_34 = arith.constant 0 : index
    %33 = vector.load %arg7[%c3_32, %c0_33, %c0_34] : memref<9x16x16xf32, #tpu.memory_space<vmem>>, vector<1x16x16xf32>
    %34 = vector.shape_cast %33 : vector<1x16x16xf32> to vector<16x16xf32>
    %cst_35 = arith.constant dense<0.000000e+00> : vector<16x128xf32>
    %35 = tpu.matmul %34, %32, %cst_35 {dimension_numbers = #tpu.dot_dimension_numbers<[1], [0], [0], [1], [0, 0, 1, 1], [], []>} : vector<16x16xf32>, vector<16x128xf32>, vector<16x128xf32> -> vector<16x128xf32>
    %36 = arith.addf %29, %35 : vector<16x128xf32>
    %c4 = arith.constant 4 : index
    %c0_36 = arith.constant 0 : index
    %c0_37 = arith.constant 0 : index
    %37 = vector.load %arg2[%c4, %c0_36, %c0_37] : memref<9x128x128xf32, #tpu.memory_space<vmem>>, vector<1x128x128xf32>
    %38 = vector.shape_cast %37 : vector<1x128x128xf32> to vector<128x128xf32>
    %cst_38 = arith.constant dense<0.000000e+00> : vector<16x128xf32>
    %39 = tpu.matmul %7, %38, %cst_38 {dimension_numbers = #tpu.dot_dimension_numbers<[1], [0], [0], [1], [0, 0, 1, 1], [], []>} : vector<16x128xf32>, vector<128x128xf32>, vector<16x128xf32> -> vector<16x128xf32>
    %c4_39 = arith.constant 4 : index
    %c0_40 = arith.constant 0 : index
    %c0_41 = arith.constant 0 : index
    %40 = vector.load %arg7[%c4_39, %c0_40, %c0_41] : memref<9x16x16xf32, #tpu.memory_space<vmem>>, vector<1x16x16xf32>
    %41 = vector.shape_cast %40 : vector<1x16x16xf32> to vector<16x16xf32>
    %cst_42 = arith.constant dense<0.000000e+00> : vector<16x128xf32>
    %42 = tpu.matmul %41, %39, %cst_42 {dimension_numbers = #tpu.dot_dimension_numbers<[1], [0], [0], [1], [0, 0, 1, 1], [], []>} : vector<16x16xf32>, vector<16x128xf32>, vector<16x128xf32> -> vector<16x128xf32>
    %43 = arith.addf %36, %42 : vector<16x128xf32>
    %c5 = arith.constant 5 : index
    %c0_43 = arith.constant 0 : index
    %c0_44 = arith.constant 0 : index
    %44 = vector.load %arg2[%c5, %c0_43, %c0_44] : memref<9x128x128xf32, #tpu.memory_space<vmem>>, vector<1x128x128xf32>
    %45 = vector.shape_cast %44 : vector<1x128x128xf32> to vector<128x128xf32>
    %cst_45 = arith.constant dense<0.000000e+00> : vector<16x128xf32>
    %46 = tpu.matmul %7, %45, %cst_45 {dimension_numbers = #tpu.dot_dimension_numbers<[1], [0], [0], [1], [0, 0, 1, 1], [], []>} : vector<16x128xf32>, vector<128x128xf32>, vector<16x128xf32> -> vector<16x128xf32>
    %c5_46 = arith.constant 5 : index
    %c0_47 = arith.constant 0 : index
    %c0_48 = arith.constant 0 : index
    %47 = vector.load %arg7[%c5_46, %c0_47, %c0_48] : memref<9x16x16xf32, #tpu.memory_space<vmem>>, vector<1x16x16xf32>
    %48 = vector.shape_cast %47 : vector<1x16x16xf32> to vector<16x16xf32>
    %cst_49 = arith.constant dense<0.000000e+00> : vector<16x128xf32>
    %49 = tpu.matmul %48, %46, %cst_49 {dimension_numbers = #tpu.dot_dimension_numbers<[1], [0], [0], [1], [0, 0, 1, 1], [], []>} : vector<16x16xf32>, vector<16x128xf32>, vector<16x128xf32> -> vector<16x128xf32>
    %50 = arith.addf %43, %49 : vector<16x128xf32>
    %c6 = arith.constant 6 : index
    %c0_50 = arith.constant 0 : index
    %c0_51 = arith.constant 0 : index
    %51 = vector.load %arg2[%c6, %c0_50, %c0_51] : memref<9x128x128xf32, #tpu.memory_space<vmem>>, vector<1x128x128xf32>
    %52 = vector.shape_cast %51 : vector<1x128x128xf32> to vector<128x128xf32>
    %cst_52 = arith.constant dense<0.000000e+00> : vector<16x128xf32>
    %53 = tpu.matmul %7, %52, %cst_52 {dimension_numbers = #tpu.dot_dimension_numbers<[1], [0], [0], [1], [0, 0, 1, 1], [], []>} : vector<16x128xf32>, vector<128x128xf32>, vector<16x128xf32> -> vector<16x128xf32>
    %c6_53 = arith.constant 6 : index
    %c0_54 = arith.constant 0 : index
    %c0_55 = arith.constant 0 : index
    %54 = vector.load %arg7[%c6_53, %c0_54, %c0_55] : memref<9x16x16xf32, #tpu.memory_space<vmem>>, vector<1x16x16xf32>
    %55 = vector.shape_cast %54 : vector<1x16x16xf32> to vector<16x16xf32>
    %cst_56 = arith.constant dense<0.000000e+00> : vector<16x128xf32>
    %56 = tpu.matmul %55, %53, %cst_56 {dimension_numbers = #tpu.dot_dimension_numbers<[1], [0], [0], [1], [0, 0, 1, 1], [], []>} : vector<16x16xf32>, vector<16x128xf32>, vector<16x128xf32> -> vector<16x128xf32>
    %57 = arith.addf %50, %56 : vector<16x128xf32>
    %c7 = arith.constant 7 : index
    %c0_57 = arith.constant 0 : index
    %c0_58 = arith.constant 0 : index
    %58 = vector.load %arg2[%c7, %c0_57, %c0_58] : memref<9x128x128xf32, #tpu.memory_space<vmem>>, vector<1x128x128xf32>
    %59 = vector.shape_cast %58 : vector<1x128x128xf32> to vector<128x128xf32>
    %cst_59 = arith.constant dense<0.000000e+00> : vector<16x128xf32>
    %60 = tpu.matmul %7, %59, %cst_59 {dimension_numbers = #tpu.dot_dimension_numbers<[1], [0], [0], [1], [0, 0, 1, 1], [], []>} : vector<16x128xf32>, vector<128x128xf32>, vector<16x128xf32> -> vector<16x128xf32>
    %c7_60 = arith.constant 7 : index
    %c0_61 = arith.constant 0 : index
    %c0_62 = arith.constant 0 : index
    %61 = vector.load %arg7[%c7_60, %c0_61, %c0_62] : memref<9x16x16xf32, #tpu.memory_space<vmem>>, vector<1x16x16xf32>
    %62 = vector.shape_cast %61 : vector<1x16x16xf32> to vector<16x16xf32>
    %cst_63 = arith.constant dense<0.000000e+00> : vector<16x128xf32>
    %63 = tpu.matmul %62, %60, %cst_63 {dimension_numbers = #tpu.dot_dimension_numbers<[1], [0], [0], [1], [0, 0, 1, 1], [], []>} : vector<16x16xf32>, vector<16x128xf32>, vector<16x128xf32> -> vector<16x128xf32>
    %64 = arith.addf %57, %63 : vector<16x128xf32>
    %c8 = arith.constant 8 : index
    %c0_64 = arith.constant 0 : index
    %c0_65 = arith.constant 0 : index
    %65 = vector.load %arg2[%c8, %c0_64, %c0_65] : memref<9x128x128xf32, #tpu.memory_space<vmem>>, vector<1x128x128xf32>
    %66 = vector.shape_cast %65 : vector<1x128x128xf32> to vector<128x128xf32>
    %cst_66 = arith.constant dense<0.000000e+00> : vector<16x128xf32>
    %67 = tpu.matmul %7, %66, %cst_66 {dimension_numbers = #tpu.dot_dimension_numbers<[1], [0], [0], [1], [0, 0, 1, 1], [], []>} : vector<16x128xf32>, vector<128x128xf32>, vector<16x128xf32> -> vector<16x128xf32>
    %c8_67 = arith.constant 8 : index
    %c0_68 = arith.constant 0 : index
    %c0_69 = arith.constant 0 : index
    %68 = vector.load %arg7[%c8_67, %c0_68, %c0_69] : memref<9x16x16xf32, #tpu.memory_space<vmem>>, vector<1x16x16xf32>
    %69 = vector.shape_cast %68 : vector<1x16x16xf32> to vector<16x16xf32>
    %cst_70 = arith.constant dense<0.000000e+00> : vector<16x128xf32>
    %70 = tpu.matmul %69, %67, %cst_70 {dimension_numbers = #tpu.dot_dimension_numbers<[1], [0], [0], [1], [0, 0, 1, 1], [], []>} : vector<16x16xf32>, vector<16x128xf32>, vector<16x128xf32> -> vector<16x128xf32>
    %71 = arith.addf %64, %70 : vector<16x128xf32>
    %c0_71 = arith.constant 0 : index
    %c0_72 = arith.constant 0 : index
    %72 = vector.load %arg8[%c0_71, %c0_72] : memref<16x1xf32, #tpu.memory_space<vmem>>, vector<16x1xf32>
    %73 = vector.broadcast %72 : vector<16x1xf32> to vector<16x128xf32>
    %74 = arith.addf %71, %73 : vector<16x128xf32>
    %cst_73 = arith.constant 0.000000e+00 : f32
    %75 = vector.broadcast %cst_73 : f32 to vector<16x128xf32>
    %76 = arith.maximumf %74, %75 : vector<16x128xf32>
    %c0_74 = arith.constant 0 : index
    %c0_75 = arith.constant 0 : index
    %77 = vector.load %arg3[%c0_74, %c0_75] : memref<128x2xf32, #tpu.memory_space<vmem>>, vector<128x2xf32>
    %cst_76 = arith.constant dense<0.000000e+00> : vector<16x2xf32>
    %78 = tpu.matmul %76, %77, %cst_76 {dimension_numbers = #tpu.dot_dimension_numbers<[1], [0], [0], [1], [0, 0, 1, 1], [], []>} : vector<16x128xf32>, vector<128x2xf32>, vector<16x2xf32> -> vector<16x2xf32>
    %c0_77 = arith.constant 0 : index
    %c0_78 = arith.constant 0 : index
    %79 = vector.load %arg9[%c0_77, %c0_78] : memref<4x16xf32, #tpu.memory_space<vmem>>, vector<4x16xf32>
    %cst_79 = arith.constant dense<0.000000e+00> : vector<4x2xf32>
    %80 = tpu.matmul %79, %78, %cst_79 {dimension_numbers = #tpu.dot_dimension_numbers<[1], [0], [0], [1], [0, 0, 1, 1], [], []>} : vector<4x16xf32>, vector<16x2xf32>, vector<4x2xf32> -> vector<4x2xf32>
    %c0_80 = arith.constant 0 : index
    %c0_81 = arith.constant 0 : index
    %81 = vector.load %arg10[%c0_80, %c0_81] : memref<4x1xf32, #tpu.memory_space<vmem>>, vector<4x1xf32>
    %82 = vector.broadcast %81 : vector<4x1xf32> to vector<4x2xf32>
    %83 = arith.addf %80, %82 : vector<4x2xf32>
    %cst_82 = arith.constant 0.000000e+00 : f32
    %84 = vector.broadcast %cst_82 : f32 to vector<4x2xf32>
    %85 = arith.maximumf %83, %84 : vector<4x2xf32>
    %c0_83 = arith.constant 0 : index
    %c0_84 = arith.constant 0 : index
    %86 = vector.load %arg11[%c0_83, %c0_84] : memref<16x4xf32, #tpu.memory_space<vmem>>, vector<16x4xf32>
    %cst_85 = arith.constant dense<0.000000e+00> : vector<16x2xf32>
    %87 = tpu.matmul %86, %85, %cst_85 {dimension_numbers = #tpu.dot_dimension_numbers<[1], [0], [0], [1], [0, 0, 1, 1], [], []>} : vector<16x4xf32>, vector<4x2xf32>, vector<16x2xf32> -> vector<16x2xf32>
    %c0_86 = arith.constant 0 : index
    %c0_87 = arith.constant 0 : index
    %88 = vector.load %arg12[%c0_86, %c0_87] : memref<16x1xf32, #tpu.memory_space<vmem>>, vector<16x1xf32>
    %89 = vector.broadcast %88 : vector<16x1xf32> to vector<16x2xf32>
    %90 = arith.addf %87, %89 : vector<16x2xf32>
    %91 = arith.negf %90 : vector<16x2xf32>
    %92 = math.exp %91 : vector<16x2xf32>
    %cst_88 = arith.constant 1.000000e+00 : f32
    %93 = vector.broadcast %cst_88 : f32 to vector<16x2xf32>
    %94 = arith.addf %93, %92 : vector<16x2xf32>
    %95 = arith.divf %93, %94 : vector<16x2xf32>
    %c0_89 = arith.constant 0 : index
    %c0_90 = arith.constant 0 : index
    %96 = vector.load %arg4[%c0_89, %c0_90] : memref<2x128xf32, #tpu.memory_space<vmem>>, vector<2x128xf32>
    %cst_91 = arith.constant dense<0.000000e+00> : vector<16x128xf32>
    %97 = tpu.matmul %95, %96, %cst_91 {dimension_numbers = #tpu.dot_dimension_numbers<[1], [0], [0], [1], [0, 0, 1, 1], [], []>} : vector<16x2xf32>, vector<2x128xf32>, vector<16x128xf32> -> vector<16x128xf32>
    %98 = arith.mulf %76, %97 : vector<16x128xf32>
    %c0_92 = arith.constant 0 : index
    %c0_93 = arith.constant 0 : index
    %99 = vector.load %arg13[%c0_92, %c0_93] : memref<16x16xf32, #tpu.memory_space<vmem>>, vector<16x16xf32>
    %cst_94 = arith.constant dense<0.000000e+00> : vector<16x128xf32>
    %100 = tpu.matmul %99, %98, %cst_94 {dimension_numbers = #tpu.dot_dimension_numbers<[1], [0], [0], [1], [0, 0, 1, 1], [], []>} : vector<16x16xf32>, vector<16x128xf32>, vector<16x128xf32> -> vector<16x128xf32>
    %c0_95 = arith.constant 0 : index
    %c0_96 = arith.constant 0 : index
    %101 = vector.load %arg14[%c0_95, %c0_96] : memref<16x1xf32, #tpu.memory_space<vmem>>, vector<16x1xf32>
    %102 = vector.broadcast %101 : vector<16x1xf32> to vector<16x128xf32>
    %103 = arith.addf %100, %102 : vector<16x128xf32>
    %104 = arith.addf %103, %0 : vector<16x128xf32>
    %cst_97 = arith.constant 0.000000e+00 : f32
    %105 = vector.broadcast %cst_97 : f32 to vector<16x128xf32>
    %106 = arith.maximumf %104, %105 : vector<16x128xf32>
    %c0_98 = arith.constant 0 : index
    %c0_99 = arith.constant 0 : index
    %107 = vector.load %arg15[%c0_98, %c0_99] : memref<16x128xf32, #tpu.memory_space<vmem>>, vector<16x128xf32>
    tpu.vector_store %arg15[%c0_98, %c0_99], %106 {strides = array<i32>} : memref<16x128xf32, #tpu.memory_space<vmem>>, vector<16x128xf32>,
    return
  }
  func.func @transform_0(%arg0: i32) -> (i32, i32) {
    %c0_i32 = arith.constant 0 : i32
    %c0_i32_0 = arith.constant 0 : i32
    return %c0_i32, %arg0 : i32, i32
  }
  func.func @transform_1(%arg0: i32) -> (i32, i32, i32) {
    %c0_i32 = arith.constant 0 : i32
    %c0_i32_0 = arith.constant 0 : i32
    %c0_i32_1 = arith.constant 0 : i32
    %c0_i32_2 = arith.constant 0 : i32
    return %c0_i32, %c0_i32_0, %c0_i32_1 : i32, i32, i32
  }
  func.func @transform_2(%arg0: i32) -> (i32, i32) {
    %c0_i32 = arith.constant 0 : i32
    %c0_i32_0 = arith.constant 0 : i32
    %c0_i32_1 = arith.constant 0 : i32
    return %c0_i32, %c0_i32_0 : i32, i32
  }
  func.func @transform_3(%arg0: i32) -> (i32, i32) {
    %c0_i32 = arith.constant 0 : i32
    %c0_i32_0 = arith.constant 0 : i32
    %c0_i32_1 = arith.constant 0 : i32
    return %c0_i32, %c0_i32_0 : i32, i32
  }
  func.func @transform_4(%arg0: i32) -> (i32, i32) {
    %c0_i32 = arith.constant 0 : i32
    %c0_i32_0 = arith.constant 0 : i32
    %c0_i32_1 = arith.constant 0 : i32
    return %c0_i32, %c0_i32_0 : i32, i32
  }
  func.func @transform_5(%arg0: i32) -> (i32, i32) {
    %c0_i32 = arith.constant 0 : i32
    %c0_i32_0 = arith.constant 0 : i32
    %c0_i32_1 = arith.constant 0 : i32
    return %c0_i32, %c0_i32_0 : i32, i32
  }
  func.func @transform_6(%arg0: i32) -> (i32, i32, i32) {
    %c0_i32 = arith.constant 0 : i32
    %c0_i32_0 = arith.constant 0 : i32
    %c0_i32_1 = arith.constant 0 : i32
    %c0_i32_2 = arith.constant 0 : i32
    return %c0_i32, %c0_i32_0, %c0_i32_1 : i32, i32, i32
  }
  func.func @transform_7(%arg0: i32) -> (i32, i32) {
    %c0_i32 = arith.constant 0 : i32
    %c0_i32_0 = arith.constant 0 : i32
    %c0_i32_1 = arith.constant 0 : i32
    return %c0_i32, %c0_i32_0 : i32, i32
  }
  func.func @transform_8(%arg0: i32) -> (i32, i32) {
    %c0_i32 = arith.constant 0 : i32
    %c0_i32_0 = arith.constant 0 : i32
    %c0_i32_1 = arith.constant 0 : i32
    return %c0_i32, %c0_i32_0 : i32, i32
  }
  func.func @transform_9(%arg0: i32) -> (i32, i32) {
    %c0_i32 = arith.constant 0 : i32
    %c0_i32_0 = arith.constant 0 : i32
    %c0_i32_1 = arith.constant 0 : i32
    return %c0_i32, %c0_i32_0 : i32, i32
  }
  func.func @transform_10(%arg0: i32) -> (i32, i32) {
    %c0_i32 = arith.constant 0 : i32
    %c0_i32_0 = arith.constant 0 : i32
    %c0_i32_1 = arith.constant 0 : i32
    return %c0_i32, %c0_i32_0 : i32, i32
  }
  func.func @transform_11(%arg0: i32) -> (i32, i32) {
    %c0_i32 = arith.constant 0 : i32
    %c0_i32_0 = arith.constant 0 : i32
    %c0_i32_1 = arith.constant 0 : i32
    return %c0_i32, %c0_i32_0 : i32, i32
  }
  func.func @transform_12(%arg0: i32) -> (i32, i32) {
    %c0_i32 = arith.constant 0 : i32
    %c0_i32_0 = arith.constant 0 : i32
    %c0_i32_1 = arith.constant 0 : i32
    return %c0_i32, %c0_i32_0 : i32, i32
  }
  func.func @transform_13(%arg0: i32) -> (i32, i32) {
    %c0_i32 = arith.constant 0 : i32
    %c0_i32_0 = arith.constant 0 : i32
    %c0_i32_1 = arith.constant 0 : i32
    return %c0_i32, %c0_i32_0 : i32, i32
  }
  func.func @transform_14(%arg0: i32) -> (i32, i32) {
    %c0_i32 = arith.constant 0 : i32
    %c0_i32_0 = arith.constant 0 : i32
    return %c0_i32, %arg0 : i32, i32
  }
}

</mosaic_0001>

<bundles_post_ra>
// kernel: bottleneck_forward.1
= control target key start
LH: loop header
LB: loop body
LE: loop exit
PB: predicated region body
PF: predicated region fallthrough
CT: control target
= control target key end

     0   :  { %s4444_s0 = inlined_call_operand.vmem [shape: f32[16,256], index: 0, kind: input, shape index: {}]   ;;  %s4445_s1 = inlined_call_operand.hbm [shape: f32[9,128,128], index: 1, kind: input, shape index: {}]   ;;  %s4446_s2 = inlined_call_operand.vmem [shape: f32[128,2], index: 2, kind: input, shape index: {}]   ;;  %s4447_s3 = inlined_call_operand.vmem [shape: f32[2,128], index: 3, kind: input, shape index: {}]   ;;  %s4448_s4 = inlined_call_operand.vmem [shape: f32[16,16], index: 4, kind: input, shape index: {}]   ;;  %s4449_s5 = inlined_call_operand.vmem [shape: f32[16,1], index: 5, kind: input, shape index: {}]   ;;  %s4450_s6 = inlined_call_operand.vmem [shape: f32[9,16,16], index: 6, kind: input, shape index: {}]   ;;  %s4451_s7 = inlined_call_operand.vmem [shape: f32[16,1], index: 7, kind: input, shape index: {}]   ;;  %s4452_s8 = inlined_call_operand.vmem [shape: f32[4,16], index: 8, kind: input, shape index: {}]   ;;  %s4453_s9 = inlined_call_operand.vmem [shape: f32[4,1], index: 9, kind: input, shape index: {}]   ;;  %s4454_s10 = inlined_call_operand.vmem [shape: f32[16,4], index: 10, kind: input, shape index: {}]   ;;  %s4455_s11 = inlined_call_operand.vmem [shape: f32[16,1], index: 11, kind: input, shape index: {}]   ;;  %s4456_s12 = inlined_call_operand.vmem [shape: f32[16,16], index: 12, kind: input, shape index: {}]   ;;  %s4457_s13 = inlined_call_operand.vmem [shape: f32[16,1], index: 13, kind: input, shape index: {}]   ;;  %s4458_s14 = inlined_call_operand.vmem [shape: f32[16,256], index: 14, kind: output, shape index: {}]  }
   0x1   :  { %4465 = sst [smem:[#allocation10_spill]] %s4456_s12 }
   0x2   :  { %4466 = sst [smem:[#allocation11_spill]] %s4458_s14 }
   0x3   :  { %19 = vsyncpa [#allocation4], 0  ;;  %s4127_s29 = smov 0   ;;  %s4129_s30 = smov 0  }
   0x4   :  { %s4131_s15 = smov 0  }
   0x5 LB: > { %s4143_s16 = sadd.s32 4294967295, %s4043_s15   ;;  %s4146_s17 = sadd.s32 1, %s4043_s15   ;;  %s4043_s15 = sphi %s4131_s15, %s4482_s15   ;;  %s4039_s30 = sphi %s4129_s30, %s4485_s30   ;;  %s4035_s29 = sphi %s4127_s29, %s4484_s29  }
   0x6   : > { %4467 = sst [smem:[#allocation7_spill]] %s4146_s17  ;;  %s29_s18 = ssub.s32 %s4043_s15, %s4146_s17 }
   0x7   : > { %s32_s19 = sadd.s32 1, %s4039_s30  ;;  %p30_p0 = scmp.eq.s32.totalorder %s29_s18, 0 }
   0x8   : > { %p39_p1 = scmp.ne.s32.totalorder %s4039_s30, %s4035_s29  ;;  %p40_p2 = scmp.eq.s32.totalorder %s4043_s15, 0 }
   0x9   : > { %p342_p3 = scmp.eq.s32.totalorder %s4143_s16, 1  ;;  %p2816_p6 = scmp.ge.s32.totalorder %s4043_s15, 1 }
   0xa   : > { %s4156_s20 = scalar_select %p30_p0, %s4039_s30, %s32_s19  }
   0xb   : > { %p4158_p4 = por %p40_p2, %p39_p1  ;;  %p4162_p5 = por %p342_p3, %p39_p1 }
   0xc   : > { %4468 = sst [smem:[#allocation8_spill]] %s4156_s20  ;;  %p355_p7 = scmp.lt.s32.totalorder %s4043_s15, 3 }
   0xd   : > { %s4469_s21 = scalar_select %p4158_p4, 1, 0 }
   0xe   : > { %s4470_s22 = scalar_select %p4162_p5, 1, 0 }
   0xf   : > { %p4461_p8 = scmp.eq.s32.totalorder %s4143_s16, 0  ;;  %p4169_p9 = pnand %p2816_p6, %p355_p7 }
  0x10   : > { %4471 = sst [smem:[#allocation9_spill]] %s4470_s22  ;;  %s4045_s24 = smov [#allocation3]  }
  0x11   : > { %s4472_s23 = scalar_select %p4169_p9, 1, 0 }
  0x12   : > { %s367_s25 = sshll.u32 %s4045_s24, 4  ;;  %p3940_p10 = pneg %p4169_p9  ;;  %s368_s25 = int_to_ptr.vmem [resolvable:$true] %s367_s25 }
  0x13   : > { %s3989_s18 = scalar_lea.hbm %s4445_s1, 18432 }
  0x14   : > { %p4177_p11 = pnand %p4461_p8, %p3940_p10  ;;  %p3990_p12 = scmp.ne.s32.totalorder %s4445_s1, %s3989_s18 }
  0x15   : > { %p3996_p2 = scmp.lt.u32.totalorder %s3989_s18, %s4445_s1 }
  0x16   : > { %p3991_p13 = pneg %p4177_p11 }
  0x18   : > { %p3992_p0 = pnand %p3991_p13, %p3990_p12 }
  0x1a   : > { %p3993_p1 = pneg %p3992_p0 }
  0x1c   : > { %p3998_p3 = pnand %p3996_p2, %p3993_p1 }
  0x1e   : > { %4001 = shalt.err (!%p3998_p3)
}
  0x1f   : > { %s4002_s14 = scalar_lea.vmem %s368_s25, 18432  ;;  %p4010_p8 = scmp.lt.s32.totalorder %s368_s25, %s368_s25 }
  0x20   : > { %p4003_p6 = scmp.ne.s32.totalorder %s368_s25, %s4002_s14  ;;  %p4011_p5 = scmp.lt.s32.totalorder %s4002_s14, %s4002_s14 }
  0x22   : > { %p4005_p7 = pnand %p4003_p6, %p3991_p13  ;;  %p4012_p9 = por %p4011_p5, %p4010_p8 }
  0x24   : > { %p4006_p10 = pneg %p4005_p7 }
  0x26   : > { %p4013_p4 = pnand %p4012_p9, %p4006_p10 }
  0x28   : > { %4016 = shalt.err (!%p4013_p4)
}
  0x29   : > { %s4046_s20 = smov 128   ;;  %s4047_s27 = smov 8  }
  0x2a   : > { %3943 = dma.hbm_to_vmem [thread:$0]  (!%p4177_p11), %s4445_s1, 18432, %s368_s25, [#allocation4], %s4046_s20, %s4046_s20, %s4047_s27  }
  0x2b   : > { %p2818_p12 = scmp.ge.s32.totalorder %s4043_s15, 2 }
  0x2c   : > { %p4474_p0 = scmp.ne.s32.totalorder (!%p2818_p12), %s4469_s21, 0 }
  0x2d   : > { %413 = sbr.rel (%p2818_p12) target bundleno = 59 (0x3b), region = 68 }
  0x34   : > { %416 = sbr.rel (!%p4474_p0) target bundleno = 59 (0x3b), region = 72  ;;  %s418_s14 = sand.u32 (%p4474_p0), 1, %s4039_s30  }
  0x35   : > { %s2820_s17 = sshll.u32 (%p4474_p0), %s4043_s15, 3  ;;  %s2819_s18 = sshll.u32 (%p4474_p0), %s418_s14, 4 }
  0x36   : > { %s422_s12 = scalar_lea.vmem (%p4474_p0), %s4444_s0, %s2820_s17  ;;  %s420_s26 = scalar_lea.vmem (%p4474_p0), [#allocation2], %s2819_s18 }
  0x37   : > { %v452_v0 = vld [vmem:[%s422_s12] sm:$0xff] (%p4474_p0)  ;;  %v454_v1 = vld [vmem:[%s422_s12 + $0x10] sm:$0xff] (%p4474_p0) }
  0x38   : > { %453 = vst [vmem:[%s420_s26] sm:$0xff] (%p4474_p0), %v452_v0  ;;  %455 = vst [vmem:[%s420_s26 + $0x8] sm:$0xff] (%p4474_p0), %v454_v1 }
  0x3b PF: > { %p4475_p4 = scmp.ne.s32.totalorder %s4472_s23, 0 }
  0x3c   : > { %s467_s21 = sand.u32 (!%p4475_p4), 1, %s4035_s29   ;;  %p4476_p5 = scmp.eq.s32.totalorder (!%p4475_p4), %s4143_s16, 0 }
  0x3d   : > { %464 = sbr.rel (%p4475_p4) target bundleno = 2667 (0xa6b), region = 110  ;;  %s4208_s25 = sshll.u32 (!%p4475_p4), %s467_s21, 4 }
  0x3e   : > { %s4211_s15 = scalar_lea.vmem (!%p4475_p4), [#allocation2], %s4208_s25 }
  0x44   : > { %4030 = dma.done.wait (%p4476_p5), [#allocation4], 18432   ;;  %p4477_p8 = pmov %p4476_p5 }
  0x45   : > { %v4048_v2 = vmov 0   ;;  %vm531_vm0 = vcmask 130048   ;;  %v515_v3 = vld [vmem:[%s4211_s15] sm:$0xff]  ;;  %v516_v4 = vld [vmem:[%s4211_s15 + $0x8] sm:$0xff]  ;;  %vm4050_vm1 = vmmov 0   ;;  %vm2413_vm2 = vcmask 31744  }
  0x46   : > { %4032 = vsyncadd (%p4477_p8), [#allocation4], 4294948864  ;;  %3977 = vset.pattern.permute.xlu0 %v4048_v2  ;;  %3978 = vset.pattern.permute.xlu1 %v4048_v2  ;;  %v517_v5 = vld [vmem:[%s4448_s4] sm:$0xff]  ;;  %v3553_v6 = vpack.c.bf16 %v516_v4, %v515_v3  ;;  %v518_v8 = vld [vmem:[%s4448_s4 + $0x8] sm:$0xff]  ;;  %vm2420_vm3 = vcmask 1043456   ;;  %vm2519_vm4 = vcmask 1041408  }
  0x47   : > { %3113 = vmatprep.mubr.msk.f32.mxu1 %vm531_vm0, %v517_v5  ;;  %v519_v7 = vld [vmem:[%s4449_s5] sm:$0xff]  ;;  %v520_v9 = vld [vmem:[%s4449_s5 + $0x8] sm:$0xff]  ;;  %v711_v15 = vld [vmem:[#allocation3 + $0x90] sm:$0xff]  ;;  %vm2512_vm5 = vcmask 15360   ;;  %s4478_s22 = sld [smem:[#allocation10_spill]]  ;;  %s514_s27 = scalar_lea.vmem [#allocation5], %s4208_s25 }
  0x48   : > { %523 = vperm.xlu0 %3977, %v519_v7   ;;  %3554 = vmatprep.subr.bf16.mxu1 %v3553_v6  ;;  %v709_v10 = vld [vmem:[#allocation3 + $0x80] sm:$0xff]  ;;  %v710_v11 = vld [vmem:[#allocation3 + $0x88] sm:$0xff]  ;;  %v712_v16 = vld [vmem:[#allocation3 + $0x98] sm:$0xff]  ;;  %s4479_s28 = sld [smem:[#allocation9_spill]] }
  0x49   : > { %v615_v12 = vld [vmem:[#allocation3] sm:$0xff]  ;;  %3556 = vmatpush3.bf16.msra.mxu1 %v3553_v6  ;;  %v3589_v13 = vpack.c.bf16 %v710_v11, %v709_v10  ;;  %v616_v14 = vld [vmem:[#allocation3 + $0x8] sm:$0xff]  ;;  %v3593_v18 = vpack.c.bf16 %v712_v16, %v711_v15  ;;  %v617_v19 = vld [vmem:[#allocation3 + $0x10] sm:$0xff] }
  0x4a   : > { %v3557_v17 = vpack.c.bf16 %v616_v14, %v615_v12  ;;  %v618_v20 = vld [vmem:[#allocation3 + $0x18] sm:$0xff]  ;;  %v713_v21 = vld [vmem:[#allocation3 + $0xa0] sm:$0xff]  ;;  %v714_v23 = vld [vmem:[#allocation3 + $0xa8] sm:$0xff] }
  0x4b   : > { %3590 = vmatprep.subr.bf16.mxu0 %v3589_v13  ;;  %v3561_v22 = vpack.c.bf16 %v618_v20, %v617_v19  ;;  %v619_v24 = vld [vmem:[#allocation3 + $0x20] sm:$0xff]  ;;  %v620_v25 = vld [vmem:[#allocation3 + $0x28] sm:$0xff]  ;;  %v3597_v27 = vpack.c.bf16 %v714_v23, %v713_v21  ;;  %v715_v29 = vld [vmem:[#allocation3 + $0xb0] sm:$0xff] }
  0x4c   : > { %528 = vperm.xlu0 %3977, %v520_v9   ;;  %3114 = vmatmul.mubr.msk.f32.vlgmr.msra.gmra.mrb[0].mxu1 %vm531_vm0, %v518_v8  ;;  %v2319_v26 = vld [vmem:[%s4453_s9] sm:$0xf]  ;;  %v3565_v28 = vpack.c.bf16 %v620_v25, %v619_v24  ;;  %v716_v30 = vld [vmem:[#allocation3 + $0xb8] sm:$0xff]  ;;  %v621_v31 = vld [vmem:[#allocation3 + $0x30] sm:$0xff] }
  0x4d   : > { %3558 = vmatprep.subr.bf16.mxu1 %v3557_v17  ;;  %3592 = vmatpush3.bf16.msra.mxu0 %v3589_v13  ;;  %v622_v32 = vld [vmem:[#allocation3 + $0x38] sm:$0xff]  ;;  %v2402_v33 = vld [vmem:[%s4455_s11 + $0x8] sm:$0xff]  ;;  %v3601_v34 = vpack.c.bf16 %v716_v30, %v715_v29  ;;  %v717_v36 = vld [vmem:[#allocation3 + $0xc0] sm:$0xff] }
  0x4e   : > { %3560 = vmatpush3.bf16.msra.mxu1 %v3557_v17  ;;  %3594 = vmatprep.subr.bf16.mxu0 %v3593_v18  ;;  %v3569_v35 = vpack.c.bf16 %v622_v32, %v621_v31  ;;  %v718_v37 = vld [vmem:[#allocation3 + $0xc8] sm:$0xff]  ;;  %v623_v38 = vld [vmem:[#allocation3 + $0x40] sm:$0xff]  ;;  %v719_v43 = vld [vmem:[#allocation3 + $0xd0] sm:$0xff]  ;;  %p4480_p9 = scmp.ne.s32.totalorder %s4479_s28, 0 }
  0x4f   : > { %3562 = vmatprep.subr.bf16.mxu1 %v3561_v22  ;;  %v624_v39 = vld [vmem:[#allocation3 + $0x48] sm:$0xff]  ;;  %v3605_v41 = vpack.c.bf16 %v718_v37, %v717_v36  ;;  %v720_v44 = vld [vmem:[#allocation3 + $0xd8] sm:$0xff]  ;;  %v625_v45 = vld [vmem:[#allocation3 + $0x50] sm:$0xff]  ;;  %s2873_s19 = sshll.u32 (%p4480_p9), %s4143_s16, 3  ;;  %s4481_s18 = sld [smem:[#allocation11_spill]] (%p4480_p9) }
  0x50   : > { %2322 = vperm.xlu0 %3977, %v2319_v26   ;;  %v2603_v40 = vld [vmem:[%s4457_s13 + $0x8] sm:$0xff]  ;;  %v3573_v42 = vpack.c.bf16 %v624_v39, %v623_v38  ;;  %v626_v46 = vld [vmem:[#allocation3 + $0x58] sm:$0xff]  ;;  %v3609_v47 = vpack.c.bf16 %v720_v44, %v719_v43  ;;  %v721_v49 = vld [vmem:[#allocation3 + $0xe0] sm:$0xff] }
  0x51   : > { %3596 = vmatpush3.bf16.msra.mxu0 %v3593_v18  ;;  %v3577_v48 = vpack.c.bf16 %v626_v46, %v625_v45  ;;  %v722_v50 = vld [vmem:[#allocation3 + $0xe8] sm:$0xff]  ;;  %v627_v51 = vld [vmem:[#allocation3 + $0x60] sm:$0xff]  ;;  %v723_v55 = vld [vmem:[#allocation3 + $0xf0] sm:$0xff] }
  0x52   : > { %3564 = vmatpush3.bf16.msra.mxu1 %v3561_v22  ;;  %3598 = vmatprep.subr.bf16.mxu0 %v3597_v27  ;;  %v628_v52 = vld [vmem:[#allocation3 + $0x68] sm:$0xff]  ;;  %v3613_v53 = vpack.c.bf16 %v722_v50, %v721_v49  ;;  %v724_v56 = vld [vmem:[#allocation3 + $0xf8] sm:$0xff]  ;;  %v629_v58 = vld [vmem:[#allocation3 + $0x70] sm:$0xff] }
  0x53   : > { %3566 = vmatprep.subr.bf16.mxu1 %v3565_v28  ;;  %v3581_v54 = vpack.c.bf16 %v628_v52, %v627_v51  ;;  %v3617_v57 = vpack.c.bf16 %v724_v56, %v723_v55  ;;  %v630_v59 = vld [vmem:[#allocation3 + $0x78] sm:$0xff]  ;;  %v966_v61 = vld [vmem:[#allocation3 + $0x100] sm:$0xff]  ;;  %v967_v62 = vld [vmem:[#allocation3 + $0x108] sm:$0xff] }
  0x54   : > { %2410 = vperm.xlu0 %3977, %v2402_v33   ;;  %v3585_v60 = vpack.c.bf16 %v630_v59, %v629_v58  ;;  %v3629_v63 = vpack.c.bf16 %v967_v62, %v966_v61  ;;  %v968_v6 = vld [vmem:[#allocation3 + $0x110] sm:$0xff]  ;;  %v969_v7 = vld [vmem:[#allocation3 + $0x118] sm:$0xff]  ;;  %v970_v11 = vld [vmem:[#allocation3 + $0x120] sm:$0xff] }
  0x55   : > { %3600 = vmatpush3.bf16.msra.mxu0 %v3597_v27  ;;  %v3633_v10 = vpack.c.bf16 %v969_v7, %v968_v6  ;;  %v971_v12 = vld [vmem:[#allocation3 + $0x128] sm:$0xff]  ;;  %v972_v14 = vld [vmem:[#allocation3 + $0x130] sm:$0xff]  ;;  %v973_v15 = vld [vmem:[#allocation3 + $0x138] sm:$0xff]  ;;  %s2709_s24 = scalar_lea.vmem (%p4480_p9), %s4481_s18, %s2873_s19 }
  0x56   : > { %3568 = vmatpush3.bf16.msra.mxu1 %v3565_v28  ;;  %3602 = vmatprep.subr.bf16.mxu0 %v3601_v34  ;;  %v3637_v13 = vpack.c.bf16 %v971_v12, %v970_v11  ;;  %v3641_v16 = vpack.c.bf16 %v973_v15, %v972_v14  ;;  %v974_v17 = vld [vmem:[#allocation3 + $0x140] sm:$0xff]  ;;  %v975_v18 = vld [vmem:[#allocation3 + $0x148] sm:$0xff]  ;;  %v976_v20 = vld [vmem:[#allocation3 + $0x150] sm:$0xff] }
  0x57   : > { %3570 = vmatprep.subr.bf16.mxu1 %v3569_v35  ;;  %v3645_v19 = vpack.c.bf16 %v975_v18, %v974_v17  ;;  %v977_v21 = vld [vmem:[#allocation3 + $0x158] sm:$0xff]  ;;  %v978_v23 = vld [vmem:[#allocation3 + $0x160] sm:$0xff]  ;;  %v979_v24 = vld [vmem:[#allocation3 + $0x168] sm:$0xff] }
  0x58   : > { %2611 = vperm.xlu0 %3977, %v2603_v40   ;;  %v3649_v22 = vpack.c.bf16 %v977_v21, %v976_v20  ;;  %v3653_v25 = vpack.c.bf16 %v979_v24, %v978_v23  ;;  %v980_v26 = vld [vmem:[#allocation3 + $0x170] sm:$0xff]  ;;  %v981_v27 = vld [vmem:[#allocation3 + $0x178] sm:$0xff]  ;;  %v1322_v29 = vld [vmem:[#allocation3 + $0x200] sm:$0xff] }
  0x59   : > { %3604 = vmatpush3.bf16.msra.mxu0 %v3601_v34  ;;  %v3657_v28 = vpack.c.bf16 %v981_v27, %v980_v26  ;;  %v1323_v30 = vld [vmem:[#allocation3 + $0x208] sm:$0xff]  ;;  %v1324_v32 = vld [vmem:[#allocation3 + $0x210] sm:$0xff]  ;;  %v1325_v33 = vld [vmem:[#allocation3 + $0x218] sm:$0xff] }
  0x5a   : > { %3572 = vmatpush3.bf16.msra.mxu1 %v3569_v35  ;;  %3606 = vmatprep.subr.bf16.mxu0 %v3605_v41  ;;  %v3701_v31 = vpack.c.bf16 %v1323_v30, %v1322_v29  ;;  %v3705_v34 = vpack.c.bf16 %v1325_v33, %v1324_v32  ;;  %v1326_v35 = vld [vmem:[#allocation3 + $0x220] sm:$0xff]  ;;  %v1327_v36 = vld [vmem:[#allocation3 + $0x228] sm:$0xff]  ;;  %v1328_v38 = vld [vmem:[#allocation3 + $0x230] sm:$0xff] }
  0x5b   : > { %3574 = vmatprep.subr.bf16.mxu1 %v3573_v42  ;;  %v3709_v37 = vpack.c.bf16 %v1327_v36, %v1326_v35  ;;  %v1329_v39 = vld [vmem:[#allocation3 + $0x238] sm:$0xff]  ;;  %v1332_v44 = vld [vmem:[#allocation3 + $0x250] sm:$0xff]  ;;  %v1682_v59 = vld [vmem:[#allocation3 + $0x320] sm:$0xff] }
  0x5c   : > { %v3713_v40 = vpack.c.bf16 %v1329_v39, %v1328_v38  ;;  %v1333_v45 = vld [vmem:[#allocation3 + $0x258] sm:$0xff]  ;;  %v1336_v50 = vld [vmem:[#allocation3 + $0x270] sm:$0xff]  ;;  %v1690_v7 = vld [vmem:[#allocation3 + $0x360] sm:$0xff] }
  0x5d   : > { %3608 = vmatpush3.bf16.msra.mxu0 %v3605_v41  ;;  %v1330_v41 = vld [vmem:[#allocation3 + $0x240] sm:$0xff]  ;;  %v3721_v46 = vpack.c.bf16 %v1333_v45, %v1332_v44  ;;  %v1337_v51 = vld [vmem:[#allocation3 + $0x278] sm:$0xff]  ;;  %v1680_v56 = vld [vmem:[#allocation3 + $0x310] sm:$0xff] }
  0x5e   : > { %3576 = vmatpush3.bf16.msra.mxu1 %v3573_v42  ;;  %3610 = vmatprep.subr.bf16.mxu0 %v3609_v47  ;;  %v1331_v42 = vld [vmem:[#allocation3 + $0x248] sm:$0xff]  ;;  %v3729_v52 = vpack.c.bf16 %v1337_v51, %v1336_v50  ;;  %v1684_v62 = vld [vmem:[#allocation3 + $0x330] sm:$0xff]  ;;  %v2034_v15 = vld [vmem:[#allocation3 + $0x400] sm:$0xff] }
  0x5f   : > { %3578 = vmatprep.subr.bf16.mxu1 %v3577_v48  ;;  %v3717_v43 = vpack.c.bf16 %v1331_v42, %v1330_v41  ;;  %v1692_v12 = vld [vmem:[#allocation3 + $0x370] sm:$0xff]  ;;  %v2037_v20 = vld [vmem:[#allocation3 + $0x418] sm:$0xff]  ;;  %v2039_v23 = vld [vmem:[#allocation3 + $0x428] sm:$0xff] }
  0x60   : > { %v2827_v17 = vld [vmem:[%s4450_s6 + $0x10] sm:$0xff]  ;;  %v2041_v26 = vld [vmem:[#allocation3 + $0x438] sm:$0xff]  ;;  %v2043_v29 = vld [vmem:[#allocation3 + $0x448] sm:$0xff] }
  0x61   : > { %3612 = vmatpush3.bf16.msra.mxu0 %v3609_v47  ;;  %v1334_v47 = vld [vmem:[#allocation3 + $0x260] sm:$0xff]  ;;  %v2045_v32 = vld [vmem:[#allocation3 + $0x458] sm:$0xff]  ;;  %v2047_v35 = vld [vmem:[#allocation3 + $0x468] sm:$0xff] }
  0x62   : > { %3580 = vmatpush3.bf16.msra.mxu1 %v3577_v48  ;;  %3614 = vmatprep.subr.bf16.mxu0 %v3613_v53  ;;  %v1335_v48 = vld [vmem:[#allocation3 + $0x268] sm:$0xff]  ;;  %v2049_v38 = vld [vmem:[#allocation3 + $0x478] sm:$0xff]  ;;  %v1144_v50 = vld [vmem:[#allocation3 + $0x180] sm:$0xff] }
  0x63   : > { %3582 = vmatprep.subr.bf16.mxu1 %v3581_v54  ;;  %v3725_v49 = vpack.c.bf16 %v1335_v48, %v1334_v47  ;;  %v706_v47 = vld [vmem:[%s4450_s6] sm:$0xff]  ;;  %v707_v48 = vld [vmem:[%s4450_s6 + $0x8] sm:$0xff] }
  0x64   : > { %v1145_v51 = vld [vmem:[#allocation3 + $0x188] sm:$0xff] }
  0x65   : > { %3616 = vmatpush3.bf16.msra.mxu0 %v3613_v53  ;;  %v1678_v53 = vld [vmem:[#allocation3 + $0x300] sm:$0xff] }
  0x66   : > { %3584 = vmatpush3.bf16.msra.mxu1 %v3581_v54  ;;  %3618 = vmatprep.subr.bf16.mxu0 %v3617_v57  ;;  %v1679_v54 = vld [vmem:[#allocation3 + $0x308] sm:$0xff] }
  0x67   : > { %3586 = vmatprep.subr.bf16.mxu1 %v3585_v60  ;;  %v3773_v55 = vpack.c.bf16 %v1679_v54, %v1678_v53 }
  0x69   : > { %3620 = vmatpush3.bf16.msra.mxu0 %v3617_v57  ;;  %v1681_v57 = vld [vmem:[#allocation3 + $0x318] sm:$0xff] }
  0x6a   : > { %3588 = vmatpush3.bf16.msra.mxu1 %v3585_v60  ;;  %3630 = vmatprep.subr.bf16.mxu0 %v3629_v63  ;;  %v3777_v58 = vpack.c.bf16 %v1681_v57, %v1680_v56  ;;  %v1683_v60 = vld [vmem:[#allocation3 + $0x328] sm:$0xff]  ;;  %v1146_v56 = vld [vmem:[#allocation3 + $0x190] sm:$0xff]  ;;  %v1147_v57 = vld [vmem:[#allocation3 + $0x198] sm:$0xff] }
  0x6b   : > { %v3781_v61 = vpack.c.bf16 %v1683_v60, %v1682_v59  ;;  %v3669_v59 = vpack.c.bf16 %v1147_v57, %v1146_v56  ;;  %v1148_v60 = vld [vmem:[#allocation3 + $0x1a0] sm:$0xff]  ;;  %v2845_v56 = vld [vmem:[%s4450_s6 + $0x50] sm:$0xff] }
  0xc7   : > { %v524_v0 = vpop.permute.xlu0 %523 }
  0xcb   : > { %v529_v1 = vpop.permute.xlu0 %528 }
 0x11f   : > { %v3115_v2 = vpop.f32.mrb[0].mxu1 }
 0x120   : > { %v610_v3 = vadd.f32 %v3115_v2, %v529_v1  ;;  %v604_v4 = vpop.f32.mrb[1].mxu1  ;;  %v1686_v1 = vld [vmem:[#allocation3 + $0x340] sm:$0xff]  ;;  %v1687_v2 = vld [vmem:[#allocation3 + $0x348] sm:$0xff] }
 0x121   : > { %v605_v5 = vadd.f32 %v604_v4, %v524_v0  ;;  %v1688_v4 = vld [vmem:[#allocation3 + $0x350] sm:$0xff] }
 0x122   : > { %v4244_v9 = vmax.f32 %v610_v3, 0.0  ;;  %v3789_v3 = vpack.c.bf16 %v1687_v2, %v1686_v1  ;;  %v1152_v2 = vld [vmem:[#allocation3 + $0x1c0] sm:$0xff] }
 0x123   : > { %v4242_v8 = vmax.f32 %v605_v5, 0.0  ;;  %v1689_v5 = vld [vmem:[#allocation3 + $0x358] sm:$0xff] }
 0x124   : > { %v3793_v6 = vpack.c.bf16 %v1689_v5, %v1688_v4  ;;  %v1154_v5 = vld [vmem:[#allocation3 + $0x1d0] sm:$0xff] }
 0x125   : > { %3148 = vmatprep.mubr.f32.mxu1 %v4242_v8  ;;  %3183 = vmatprep.mubr.f32.mxu0 %v4242_v8 }
 0x126   : > { %3149 = vmatmul.mubr.f32.vlgmr.msra.gmra.mrb[2].mxu1 %v4244_v9  ;;  %3184 = vmatmul.mubr.f32.vlgmr.msra.gmra.mrb[0].mxu0 %v4244_v9 }
 0x127   : > { %3632 = vmatpush3.bf16.msra.mxu0 %v3629_v63  ;;  %3232 = vmatprep.mubr.f32.mxu0 %v4242_v8  ;;  %v1685_v63 = vld [vmem:[#allocation3 + $0x338] sm:$0xff] }
 0x128   : > { %3634 = vmatprep.subr.bf16.mxu0 %v3633_v10  ;;  %v3785_v0 = vpack.c.bf16 %v1685_v63, %v1684_v62  ;;  %3190 = vmatprep.mubr.msk.f32.mxu1 %vm531_vm0, %v2827_v17  ;;  %v1150_v63 = vld [vmem:[#allocation3 + $0x1b0] sm:$0xff] }
 0x12b   : > { %3636 = vmatpush3.bf16.msra.mxu0 %v3633_v10  ;;  %v1691_v10 = vld [vmem:[#allocation3 + $0x368] sm:$0xff] }
 0x12c   : > { %3638 = vmatprep.subr.bf16.mxu0 %v3637_v13  ;;  %v3797_v11 = vpack.c.bf16 %v1691_v10, %v1690_v7  ;;  %v1156_v10 = vld [vmem:[#allocation3 + $0x1e0] sm:$0xff] }
 0x12f   : > { %3640 = vmatpush3.bf16.msra.mxu0 %v3637_v13  ;;  %v1693_v13 = vld [vmem:[#allocation3 + $0x378] sm:$0xff] }
 0x130   : > { %3642 = vmatprep.subr.bf16.mxu0 %v3641_v16  ;;  %v3801_v14 = vpack.c.bf16 %v1693_v13, %v1692_v12  ;;  %v1158_v13 = vld [vmem:[#allocation3 + $0x1f0] sm:$0xff] }
 0x133   : > { %3644 = vmatpush3.bf16.msra.mxu0 %v3641_v16  ;;  %v2035_v16 = vld [vmem:[#allocation3 + $0x408] sm:$0xff] }
 0x134   : > { %3646 = vmatprep.subr.bf16.mxu0 %v3645_v19  ;;  %v3845_v18 = vpack.c.bf16 %v2035_v16, %v2034_v15 }
 0x137   : > { %3648 = vmatpush3.bf16.msra.mxu0 %v3645_v19  ;;  %v2036_v19 = vld [vmem:[#allocation3 + $0x410] sm:$0xff] }
 0x138   : > { %3650 = vmatprep.subr.bf16.mxu0 %v3649_v22  ;;  %v3849_v21 = vpack.c.bf16 %v2037_v20, %v2036_v19 }
 0x13b   : > { %3652 = vmatpush3.bf16.msra.mxu0 %v3649_v22  ;;  %v2038_v22 = vld [vmem:[#allocation3 + $0x420] sm:$0xff] }
 0x13c   : > { %3654 = vmatprep.subr.bf16.mxu0 %v3653_v25  ;;  %v3853_v24 = vpack.c.bf16 %v2039_v23, %v2038_v22 }
 0x13f   : > { %3656 = vmatpush3.bf16.msra.mxu0 %v3653_v25  ;;  %v2040_v25 = vld [vmem:[#allocation3 + $0x430] sm:$0xff] }
 0x140   : > { %3658 = vmatprep.subr.bf16.mxu0 %v3657_v28  ;;  %v3857_v27 = vpack.c.bf16 %v2041_v26, %v2040_v25  ;;  %v2837_v25 = vld [vmem:[%s4450_s6 + $0x30] sm:$0xff] }
 0x143   : > { %3660 = vmatpush3.bf16.msra.mxu0 %v3657_v28  ;;  %v2042_v28 = vld [vmem:[#allocation3 + $0x440] sm:$0xff] }
 0x144   : > { %3702 = vmatprep.subr.bf16.mxu0 %v3701_v31  ;;  %v3861_v30 = vpack.c.bf16 %v2043_v29, %v2042_v28  ;;  %v1500_v29 = vld [vmem:[#allocation3 + $0x280] sm:$0xff] }
 0x146   : > { %3233 = vmatmul.mubr.f32.vlgmr.msra.gmra.mrb[2].mxu0 %v4244_v9 }
 0x147   : > { %3704 = vmatpush3.bf16.msra.mxu0 %v3701_v31  ;;  %3316 = vmatprep.mubr.f32.mxu0 %v4242_v8  ;;  %v2044_v31 = vld [vmem:[#allocation3 + $0x450] sm:$0xff] }
 0x148   : > { %3706 = vmatprep.subr.bf16.mxu0 %v3705_v34  ;;  %v3865_v33 = vpack.c.bf16 %v2045_v32, %v2044_v31  ;;  %v2838_v31 = vld [vmem:[%s4450_s6 + $0x38] sm:$0xff]  ;;  %v2841_v32 = vld [vmem:[%s4450_s6 + $0x40] sm:$0xff] }
 0x14b   : > { %3708 = vmatpush3.bf16.msra.mxu0 %v3705_v34  ;;  %v2046_v34 = vld [vmem:[#allocation3 + $0x460] sm:$0xff] }
 0x14c   : > { %3710 = vmatprep.subr.bf16.mxu0 %v3709_v37  ;;  %v3869_v36 = vpack.c.bf16 %v2047_v35, %v2046_v34  ;;  %v1502_v34 = vld [vmem:[#allocation3 + $0x290] sm:$0xff]  ;;  %v1503_v35 = vld [vmem:[#allocation3 + $0x298] sm:$0xff] }
 0x14f   : > { %3712 = vmatpush3.bf16.msra.mxu0 %v3709_v37  ;;  %v2048_v37 = vld [vmem:[#allocation3 + $0x470] sm:$0xff] }
 0x150   : > { %3714 = vmatprep.subr.bf16.mxu0 %v3713_v40  ;;  %v3873_v39 = vpack.c.bf16 %v2049_v38, %v2048_v37  ;;  %v3741_v37 = vpack.c.bf16 %v1503_v35, %v1502_v34  ;;  %v1504_v38 = vld [vmem:[#allocation3 + $0x2a0] sm:$0xff]  ;;  %v2232_v34 = vld [vmem:[%s4446_s2 + $0x28] sm:$0xff] }
 0x151   : > { %v2401_v35 = vld [vmem:[%s4455_s11] sm:$0xff] }
 0x153   : > { %3716 = vmatpush3.bf16.msra.mxu0 %v3713_v40 }
 0x154   : > { %3718 = vmatprep.subr.bf16.mxu0 %v3717_v43 }
 0x157   : > { %3720 = vmatpush3.bf16.msra.mxu0 %v3717_v43 }
 0x158   : > { %3722 = vmatprep.subr.bf16.mxu0 %v3721_v46 }
 0x15b   : > { %3724 = vmatpush3.bf16.msra.mxu0 %v3721_v46  ;;  %v2828_v46 = vld [vmem:[%s4450_s6 + $0x18] sm:$0xff] }
 0x15c   : > { %3726 = vmatprep.subr.bf16.mxu0 %v3725_v49 }
 0x15f   : > { %3728 = vmatpush3.bf16.msra.mxu0 %v3725_v49  ;;  %v2833_v49 = vld [vmem:[%s4450_s6 + $0x20] sm:$0xff] }
 0x160   : > { %3730 = vmatprep.subr.bf16.mxu0 %v3729_v52 }
 0x163   : > { %3732 = vmatpush3.bf16.msra.mxu0 %v3729_v52 }
 0x164   : > { %3774 = vmatprep.subr.bf16.mxu0 %v3773_v55 }
 0x166   : > { %3317 = vmatmul.mubr.f32.vlgmr.msra.gmra.mrb[4].mxu0 %v4244_v9 }
 0x167   : > { %3776 = vmatpush3.bf16.msra.mxu0 %v3773_v55  ;;  %3400 = vmatprep.mubr.f32.mxu0 %v4242_v8  ;;  %v3665_v55 = vpack.c.bf16 %v1145_v51, %v1144_v50  ;;  %v1512_v50 = vld [vmem:[#allocation3 + $0x2e0] sm:$0xff]  ;;  %v1513_v51 = vld [vmem:[#allocation3 + $0x2e8] sm:$0xff] }
 0x168   : > { %3778 = vmatprep.subr.bf16.mxu0 %v3777_v58 }
 0x16b   : > { %3780 = vmatpush3.bf16.msra.mxu0 %v3777_v58  ;;  %v2834_v58 = vld [vmem:[%s4450_s6 + $0x28] sm:$0xff] }
 0x16c   : > { %3782 = vmatprep.subr.bf16.mxu0 %v3781_v61 }
 0x16f   : > { %3784 = vmatpush3.bf16.msra.mxu0 %v3781_v61  ;;  %v1149_v61 = vld [vmem:[#allocation3 + $0x1a8] sm:$0xff] }
 0x170   : > { %3786 = vmatprep.subr.bf16.mxu0 %v3785_v0  ;;  %v3673_v62 = vpack.c.bf16 %v1149_v61, %v1148_v60  ;;  %v1856_v60 = vld [vmem:[#allocation3 + $0x380] sm:$0xff]  ;;  %v1857_v61 = vld [vmem:[#allocation3 + $0x388] sm:$0xff] }
 0x173   : > { %3788 = vmatpush3.bf16.msra.mxu0 %v3785_v0  ;;  %v1151_v0 = vld [vmem:[#allocation3 + $0x1b8] sm:$0xff] }
 0x174   : > { %3790 = vmatprep.subr.bf16.mxu0 %v3789_v3  ;;  %v3677_v1 = vpack.c.bf16 %v1151_v0, %v1150_v63  ;;  %v2849_v63 = vld [vmem:[%s4450_s6 + $0x60] sm:$0xff]  ;;  %v3809_v0 = vpack.c.bf16 %v1857_v61, %v1856_v60 }
 0x177   : > { %3792 = vmatpush3.bf16.msra.mxu0 %v3789_v3  ;;  %v1153_v3 = vld [vmem:[#allocation3 + $0x1c8] sm:$0xff] }
 0x178   : > { %3794 = vmatprep.subr.bf16.mxu0 %v3793_v6  ;;  %v3681_v4 = vpack.c.bf16 %v1153_v3, %v1152_v2  ;;  %v1859_v2 = vld [vmem:[#allocation3 + $0x398] sm:$0xff]  ;;  %v2850_v3 = vld [vmem:[%s4450_s6 + $0x68] sm:$0xff] }
 0x17b   : > { %3796 = vmatpush3.bf16.msra.mxu0 %v3793_v6  ;;  %v1155_v6 = vld [vmem:[#allocation3 + $0x1d8] sm:$0xff] }
 0x17c   : > { %3798 = vmatprep.subr.bf16.mxu0 %v3797_v11  ;;  %v3685_v7 = vpack.c.bf16 %v1155_v6, %v1154_v5  ;;  %v1860_v5 = vld [vmem:[#allocation3 + $0x3a0] sm:$0xff]  ;;  %v1861_v6 = vld [vmem:[#allocation3 + $0x3a8] sm:$0xff] }
 0x17f   : > { %3800 = vmatpush3.bf16.msra.mxu0 %v3797_v11  ;;  %v1157_v11 = vld [vmem:[#allocation3 + $0x1e8] sm:$0xff] }
 0x180   : > { %3802 = vmatprep.subr.bf16.mxu0 %v3801_v14  ;;  %v3689_v12 = vpack.c.bf16 %v1157_v11, %v1156_v10  ;;  %v1862_v10 = vld [vmem:[#allocation3 + $0x3b0] sm:$0xff]  ;;  %v1863_v11 = vld [vmem:[#allocation3 + $0x3b8] sm:$0xff] }
 0x183   : > { %3804 = vmatpush3.bf16.msra.mxu0 %v3801_v14  ;;  %v1159_v14 = vld [vmem:[#allocation3 + $0x1f8] sm:$0xff] }
 0x184   : > { %3846 = vmatprep.subr.bf16.mxu0 %v3845_v18  ;;  %v3693_v15 = vpack.c.bf16 %v1159_v14, %v1158_v13  ;;  %v1864_v13 = vld [vmem:[#allocation3 + $0x3c0] sm:$0xff]  ;;  %v1865_v14 = vld [vmem:[#allocation3 + $0x3c8] sm:$0xff] }
 0x186   : > { %3401 = vmatmul.mubr.f32.vlgmr.msra.gmra.mrb[6].mxu0 %v4244_v9 }
 0x187   : > { %3848 = vmatpush3.bf16.msra.mxu0 %v3845_v18  ;;  %3484 = vmatprep.mubr.f32.mxu0 %v4242_v8 }
 0x188   : > { %3850 = vmatprep.subr.bf16.mxu0 %v3849_v21 }
 0x18b   : > { %3852 = vmatpush3.bf16.msra.mxu0 %v3849_v21 }
 0x18c   : > { %3854 = vmatprep.subr.bf16.mxu0 %v3853_v24 }
 0x18f   : > { %3856 = vmatpush3.bf16.msra.mxu0 %v3853_v24 }
 0x190   : > { %3858 = vmatprep.subr.bf16.mxu0 %v3857_v27 }
 0x193   : > { %3860 = vmatpush3.bf16.msra.mxu0 %v3857_v27 }
 0x194   : > { %3862 = vmatprep.subr.bf16.mxu0 %v3861_v30 }
 0x197   : > { %3864 = vmatpush3.bf16.msra.mxu0 %v3861_v30  ;;  %v1501_v30 = vld [vmem:[#allocation3 + $0x288] sm:$0xff] }
 0x198   : > { %3866 = vmatprep.subr.bf16.mxu0 %v3865_v33 }
 0x19b   : > { %3868 = vmatpush3.bf16.msra.mxu0 %v3865_v33  ;;  %v3737_v33 = vpack.c.bf16 %v1501_v30, %v1500_v29  ;;  %v2229_v30 = vld [vmem:[%s4446_s2 + $0x10] sm:$0xff] }
 0x19c   : > { %3870 = vmatprep.subr.bf16.mxu0 %v3869_v36 }
 0x19f   : > { %3872 = vmatpush3.bf16.msra.mxu0 %v3869_v36  ;;  %v2842_v36 = vld [vmem:[%s4450_s6 + $0x48] sm:$0xff] }
 0x1a0   : > { %3874 = vmatprep.subr.bf16.mxu0 %v3873_v39 }
 0x1a3   : > { %3876 = vmatpush3.bf16.msra.mxu0 %v3873_v39  ;;  %v1505_v39 = vld [vmem:[#allocation3 + $0x2a8] sm:$0xff] }
 0x1a6   : > { %3485 = vmatmul.mubr.f32.vlgmr.msra.gmra.mrb[8].mxu0 %v4244_v9 }
 0x1f9   : > { %v3150_v40 = vpop.f32.mrb[2].mxu1  ;;  %v3185_v41 = vpop.f32.mrb[0].mxu0 }
 0x1fa   : > { %v697_v42 = vpop.f32.mrb[3].mxu1  ;;  %v791_v43 = vpop.f32.mrb[1].mxu0 }
 0x1fb   : > { %v3625_v44 = vpack.c.bf16 %v3150_v40, %v697_v42  ;;  %v3621_v45 = vpack.c.bf16 %v3185_v41, %v791_v43  ;;  %v3745_v40 = vpack.c.bf16 %v1505_v39, %v1504_v38  ;;  %v1506_v41 = vld [vmem:[#allocation3 + $0x2b0] sm:$0xff]  ;;  %v1507_v42 = vld [vmem:[#allocation3 + $0x2b8] sm:$0xff]  ;;  %v2602_v39 = vld [vmem:[%s4457_s13] sm:$0xff] }
 0x1fc   : > { %v3749_v43 = vpack.c.bf16 %v1507_v42, %v1506_v41  ;;  %v2234_v38 = vld [vmem:[%s4446_s2 + $0x38] sm:$0xff]  ;;  %v2235_v41 = vld [vmem:[%s4446_s2 + $0x40] sm:$0xff]  ;;  %v2236_v42 = vld [vmem:[%s4446_s2 + $0x48] sm:$0xff] }
 0x1fd   : > { %3622 = vmatprep.subr.bf16.mxu1 %v3621_v45 }
 0x1fe   : > { %3624 = vmatpush3.bf16.msra.mxu1 %v3621_v45  ;;  %v1509_v45 = vld [vmem:[#allocation3 + $0x2c8] sm:$0xff] }
 0x1ff   : > { %3626 = vmatprep.subr.bf16.mxu1 %v3625_v44 }
 0x201   : > { %3191 = vmatmul.mubr.msk.f32.vlgmr.msra.gmra.mrb[4].mxu1 %vm531_vm0, %v2828_v46 }
 0x202   : > { %3628 = vmatpush3.bf16.msra.mxu1 %v3625_v44  ;;  %3197 = vmatprep.mubr.msk.f32.mxu1 %vm531_vm0, %v706_v47  ;;  %v1508_v44 = vld [vmem:[#allocation3 + $0x2c0] sm:$0xff]  ;;  %v1510_v47 = vld [vmem:[#allocation3 + $0x2d0] sm:$0xff] }
 0x203   : > { %v3753_v46 = vpack.c.bf16 %v1509_v45, %v1508_v44  ;;  %v2237_v44 = vld [vmem:[%s4446_s2 + $0x50] sm:$0xff]  ;;  %v2238_v45 = vld [vmem:[%s4446_s2 + $0x58] sm:$0xff] }
 0x209   : > { %3198 = vmatmul.mubr.msk.f32.vlgmr.msra.gmra.mrb[4].mxu1 %vm531_vm0, %v707_v48  ;;  %v1511_v48 = vld [vmem:[#allocation3 + $0x2d8] sm:$0xff] }
 0x20a   : > { %3239 = vmatprep.mubr.msk.f32.mxu1 %vm531_vm0, %v2833_v49  ;;  %v3757_v49 = vpack.c.bf16 %v1511_v48, %v1510_v47  ;;  %v2239_v47 = vld [vmem:[%s4446_s2 + $0x60] sm:$0xff]  ;;  %v2240_v48 = vld [vmem:[%s4446_s2 + $0x68] sm:$0xff] }
 0x219   : > { %v3234_v52 = vpop.f32.mrb[2].mxu0 }
 0x21a   : > { %v1048_v53 = vpop.f32.mrb[3].mxu0 }
 0x21b   : > { %v3661_v54 = vpack.c.bf16 %v3234_v52, %v1048_v53  ;;  %v3761_v52 = vpack.c.bf16 %v1513_v51, %v1512_v50  ;;  %v1514_v53 = vld [vmem:[#allocation3 + $0x2f0] sm:$0xff] }
 0x21d   : > { %3662 = vmatprep.subr.bf16.mxu1 %v3661_v54 }
 0x21e   : > { %3664 = vmatpush3.bf16.msra.mxu1 %v3661_v54  ;;  %v1515_v54 = vld [vmem:[#allocation3 + $0x2f8] sm:$0xff] }
 0x21f   : > { %3666 = vmatprep.subr.bf16.mxu1 %v3665_v55 }
 0x221   : > { %3240 = vmatmul.mubr.msk.f32.vlgmr.msra.gmra.mrb[4].mxu1 %vm531_vm0, %v2834_v58 }
 0x222   : > { %3668 = vmatpush3.bf16.msra.mxu1 %v3665_v55  ;;  %3274 = vmatprep.mubr.f32.mxu1 %v4242_v8  ;;  %v3765_v55 = vpack.c.bf16 %v1515_v54, %v1514_v53  ;;  %v2854_v53 = vld [vmem:[%s4450_s6 + $0x78] sm:$0xff]  ;;  %v2857_v54 = vld [vmem:[%s4450_s6 + $0x80] sm:$0xff] }
 0x223   : > { %3670 = vmatprep.subr.bf16.mxu1 %v3669_v59 }
 0x226   : > { %3672 = vmatpush3.bf16.msra.mxu1 %v3669_v59 }
 0x227   : > { %3674 = vmatprep.subr.bf16.mxu1 %v3673_v62 }
 0x22a   : > { %3676 = vmatpush3.bf16.msra.mxu1 %v3673_v62  ;;  %v2846_v62 = vld [vmem:[%s4450_s6 + $0x58] sm:$0xff] }
 0x22b   : > { %3678 = vmatprep.subr.bf16.mxu1 %v3677_v1 }
 0x22e   : > { %3680 = vmatpush3.bf16.msra.mxu1 %v3677_v1  ;;  %v1858_v1 = vld [vmem:[#allocation3 + $0x390] sm:$0xff] }
 0x22f   : > { %3682 = vmatprep.subr.bf16.mxu1 %v3681_v4 }
 0x232   : > { %3684 = vmatpush3.bf16.msra.mxu1 %v3681_v4  ;;  %v3813_v4 = vpack.c.bf16 %v1859_v2, %v1858_v1  ;;  %v4049_v2 = vmov 0.0|0.0  }
 0x233   : > { %3686 = vmatprep.subr.bf16.mxu1 %v3685_v7 }
 0x236   : > { %3688 = vmatpush3.bf16.msra.mxu1 %v3685_v7  ;;  %v3817_v7 = vpack.c.bf16 %v1861_v6, %v1860_v5 }
 0x237   : > { %3690 = vmatprep.subr.bf16.mxu1 %v3689_v12 }
 0x239   : > { %v3318_v16 = vpop.f32.mrb[4].mxu0 }
 0x23a   : > { %3692 = vmatpush3.bf16.msra.mxu1 %v3689_v12  ;;  %v1404_v17 = vpop.f32.mrb[5].mxu0  ;;  %v3821_v12 = vpack.c.bf16 %v1863_v11, %v1862_v10  ;;  %v2399_v10 = vld [vmem:[%s4454_s10] sm:$0xff]  ;;  %v2323_v11 = vpop.permute.xlu0 %2322 }
 0x23b   : > { %v3733_v18 = vpack.c.bf16 %v3318_v16, %v1404_v17  ;;  %3694 = vmatprep.subr.bf16.mxu1 %v3693_v15  ;;  %v1866_v16 = vld [vmem:[#allocation3 + $0x3d0] sm:$0xff]  ;;  %v1867_v17 = vld [vmem:[#allocation3 + $0x3d8] sm:$0xff] }
 0x23e   : > { %3696 = vmatpush3.bf16.msra.mxu1 %v3693_v15  ;;  %v3825_v15 = vpack.c.bf16 %v1865_v14, %v1864_v13 }
 0x241   : > { %3275 = vmatmul.mubr.f32.vlgmr.msra.gmra.mrb[6].mxu1 %v4244_v9 }
 0x242   : > { %3281 = vmatprep.mubr.msk.f32.mxu1 %vm531_vm0, %v2837_v25  ;;  %v2853_v25 = vld [vmem:[%s4450_s6 + $0x70] sm:$0xff] }
 0x259   : > { %v3402_v19 = vpop.f32.mrb[6].mxu0 }
 0x25a   : > { %v1760_v20 = vpop.f32.mrb[7].mxu0 }
 0x25b   : > { %v4284_v21 = vpack.c.bf16 %v3402_v19, %v1760_v20  ;;  %v1868_v19 = vld [vmem:[#allocation3 + $0x3e0] sm:$0xff]  ;;  %v1869_v20 = vld [vmem:[#allocation3 + $0x3e8] sm:$0xff] }
 0x279   : > { %v3486_v22 = vpop.f32.mrb[8].mxu0 }
 0x27a   : > { %v2116_v23 = vpop.f32.mrb[9].mxu0 }
 0x27b   : > { %v4286_v24 = vpack.c.bf16 %v3486_v22, %v2116_v23  ;;  %v1871_v22 = vld [vmem:[#allocation3 + $0x3f8] sm:$0xff] }
 0x314   : > { %v3276_v26 = vpop.f32.mrb[6].mxu1 }
 0x315   : > { %v1226_v27 = vpop.f32.mrb[7].mxu1 }
 0x316   : > { %v3697_v28 = vpack.c.bf16 %v3276_v26, %v1226_v27  ;;  %v2211_v26 = vld [vmem:[%s4451_s7] sm:$0xff] }
 0x317   : > { %2215 = vperm.xlu1 %3978, %v2211_v26   ;;  %v2227_v27 = vld [vmem:[%s4446_s2] sm:$0xff] }
 0x318   : > { %3698 = vmatprep.subr.bf16.mxu1 %v3697_v28 }
 0x319   : > { %3700 = vmatpush3.bf16.msra.mxu1 %v3697_v28  ;;  %v2228_v28 = vld [vmem:[%s4446_s2 + $0x8] sm:$0xff] }
 0x31a   : > { %3734 = vmatprep.subr.bf16.mxu1 %v3733_v18  ;;  %v3881_v29 = vpack.c.bf16 %v2228_v28, %v2227_v27 }
 0x31c   : > { %3282 = vmatmul.mubr.msk.f32.vlgmr.msra.gmra.mrb[4].mxu1 %vm531_vm0, %v2838_v31  ;;  %v2230_v31 = vld [vmem:[%s4446_s2 + $0x18] sm:$0xff]  ;;  %3882 = vmatprep.subr.bf16.mxu0 %v3881_v29 }
 0x31d   : > { %3736 = vmatpush3.bf16.msra.mxu1 %v3733_v18  ;;  %3323 = vmatprep.mubr.msk.f32.mxu1 %vm531_vm0, %v2841_v32  ;;  %v3829_v18 = vpack.c.bf16 %v1867_v17, %v1866_v16  ;;  %v3885_v32 = vpack.c.bf16 %v2230_v31, %v2229_v30  ;;  %v2400_v16 = vld [vmem:[%s4454_s10 + $0x8] sm:$0xff]  ;;  %v2511_v17 = vld [vmem:[%s4447_s3] sm:$0x3] }
 0x31e   : > { %3738 = vmatprep.subr.bf16.mxu1 %v3737_v33  ;;  %3884 = vmatpush3.bf16.msra.mxu0 %v3881_v29  ;;  %v2600_v31 = vld [vmem:[%s4478_s22] sm:$0xff] }
 0x31f   : > { %3886 = vmatprep.subr.bf16.mxu0 %v3885_v32 }
 0x322   : > { %3888 = vmatpush3.bf16.msra.mxu0 %v3885_v32 }
 0x324   : > { %3324 = vmatmul.mubr.msk.f32.vlgmr.msra.gmra.mrb[4].mxu1 %vm531_vm0, %v2842_v36 }
 0x325   : > { %3740 = vmatpush3.bf16.msra.mxu1 %v3737_v33  ;;  %3358 = vmatprep.mubr.f32.mxu1 %v4242_v8  ;;  %v2231_v33 = vld [vmem:[%s4446_s2 + $0x20] sm:$0xff] }
 0x326   : > { %3742 = vmatprep.subr.bf16.mxu1 %v3741_v37  ;;  %v3889_v36 = vpack.c.bf16 %v2232_v34, %v2231_v33 }
 0x328   : > { %3890 = vmatprep.subr.bf16.mxu0 %v3889_v36 }
 0x329   : > { %3744 = vmatpush3.bf16.msra.mxu1 %v3741_v37  ;;  %v2233_v37 = vld [vmem:[%s4446_s2 + $0x30] sm:$0xff]  ;;  %3892 = vmatpush3.bf16.msra.mxu0 %v3889_v36 }
 0x32a   : > { %3746 = vmatprep.subr.bf16.mxu1 %v3745_v40 }
 0x32d   : > { %3748 = vmatpush3.bf16.msra.mxu1 %v3745_v40  ;;  %v3893_v40 = vpack.c.bf16 %v2234_v38, %v2233_v37  ;;  %v2601_v37 = vld [vmem:[%s4478_s22 + $0x8] sm:$0xff] }
 0x32e   : > { %3750 = vmatprep.subr.bf16.mxu1 %v3749_v43 }
 0x32f   : > { %3894 = vmatprep.subr.bf16.mxu0 %v3893_v40 }
 0x330   : > { %3896 = vmatpush3.bf16.msra.mxu0 %v3893_v40 }
 0x331   : > { %3752 = vmatpush3.bf16.msra.mxu1 %v3749_v43  ;;  %v3897_v43 = vpack.c.bf16 %v2236_v42, %v2235_v41 }
 0x332   : > { %3754 = vmatprep.subr.bf16.mxu1 %v3753_v46 }
 0x333   : > { %3898 = vmatprep.subr.bf16.mxu0 %v3897_v43 }
 0x334   : > { %3900 = vmatpush3.bf16.msra.mxu0 %v3897_v43 }
 0x335   : > { %3756 = vmatpush3.bf16.msra.mxu1 %v3753_v46  ;;  %v3901_v46 = vpack.c.bf16 %v2238_v45, %v2237_v44  ;;  %v3987_v44 = vld [vmem:[%s4211_s15 + $0x8] sm:$0xff] }
 0x336   : > { %3758 = vmatprep.subr.bf16.mxu1 %v3757_v49 }
 0x337   : > { %3902 = vmatprep.subr.bf16.mxu0 %v3901_v46 }
 0x338   : > { %3904 = vmatpush3.bf16.msra.mxu0 %v3901_v46  ;;  %v3988_v46 = vld [vmem:[%s4211_s15] sm:$0xff] }
 0x339   : > { %3760 = vmatpush3.bf16.msra.mxu1 %v3757_v49  ;;  %v3905_v49 = vpack.c.bf16 %v2240_v48, %v2239_v47 }
 0x33a   : > { %3762 = vmatprep.subr.bf16.mxu1 %v3761_v52 }
 0x33b   : > { %3906 = vmatprep.subr.bf16.mxu0 %v3905_v49 }
 0x33c   : > { %3908 = vmatpush3.bf16.msra.mxu0 %v3905_v49 }
 0x33d   : > { %3764 = vmatpush3.bf16.msra.mxu1 %v3761_v52 }
 0x33e   : > { %3766 = vmatprep.subr.bf16.mxu1 %v3765_v55 }
 0x341   : > { %3768 = vmatpush3.bf16.msra.mxu1 %v3765_v55  ;;  %v2858_v55 = vld [vmem:[%s4450_s6 + $0x88] sm:$0xff] }
 0x344   : > { %3359 = vmatmul.mubr.f32.vlgmr.msra.gmra.mrb[8].mxu1 %v4244_v9 }
 0x345   : > { %3365 = vmatprep.mubr.msk.f32.mxu1 %vm531_vm0, %v2845_v56  ;;  %v2241_v56 = vld [vmem:[%s4446_s2 + $0x70] sm:$0xff] }
 0x417   : > { %v3360_v57 = vpop.f32.mrb[8].mxu1 }
 0x418   : > { %v1582_v58 = vpop.f32.mrb[9].mxu1 }
 0x419   : > { %v3769_v59 = vpack.c.bf16 %v3360_v57, %v1582_v58  ;;  %v2242_v57 = vld [vmem:[%s4446_s2 + $0x78] sm:$0xff] }
 0x41a   : > { %v3909_v58 = vpack.c.bf16 %v2242_v57, %v2241_v56 }
 0x41b   : > { %3770 = vmatprep.subr.bf16.mxu1 %v3769_v59 }
 0x41c   : > { %3772 = vmatpush3.bf16.msra.mxu1 %v3769_v59  ;;  %3910 = vmatprep.subr.bf16.mxu0 %v3909_v58 }
 0x41d   : > { %3806 = vmatprep.subr.bf16.mxu1 %v4284_v21  ;;  %3912 = vmatpush3.bf16.msra.mxu0 %v3909_v58 }
 0x41f   : > { %3366 = vmatmul.mubr.msk.f32.vlgmr.msra.gmra.mrb[4].mxu1 %vm531_vm0, %v2846_v62 }
 0x420   : > { %3808 = vmatpush3.bf16.msra.mxu1 %v4284_v21  ;;  %3407 = vmatprep.mubr.msk.f32.mxu1 %vm531_vm0, %v2849_v63  ;;  %v1870_v21 = vld [vmem:[#allocation3 + $0x3f0] sm:$0xff] }
 0x421   : > { %3810 = vmatprep.subr.bf16.mxu1 %v3809_v0  ;;  %v3837_v23 = vpack.c.bf16 %v1871_v22, %v1870_v21 }
 0x427   : > { %3408 = vmatmul.mubr.msk.f32.vlgmr.msra.gmra.mrb[4].mxu1 %vm531_vm0, %v2850_v3  ;;  %v4051_v3 = vmov 0.0  }
 0x428   : > { %3812 = vmatpush3.bf16.msra.mxu1 %v3809_v0  ;;  %3442 = vmatprep.mubr.f32.mxu1 %v4242_v8  ;;  %v3833_v8 = vpack.c.bf16 %v1869_v20, %v1868_v19 }
 0x429   : > { %3814 = vmatprep.subr.bf16.mxu1 %v3813_v4 }
 0x42c   : > { %3816 = vmatpush3.bf16.msra.mxu1 %v3813_v4 }
 0x42d   : > { %3818 = vmatprep.subr.bf16.mxu1 %v3817_v7 }
 0x430   : > { %3820 = vmatpush3.bf16.msra.mxu1 %v3817_v7  ;;  %v2318_v7 = vld [vmem:[%s4452_s8] sm:$0xf] }
 0x431   : > { %3822 = vmatprep.subr.bf16.mxu1 %v3821_v12 }
 0x434   : > { %3824 = vmatpush3.bf16.msra.mxu1 %v3821_v12 }
 0x435   : > { %3826 = vmatprep.subr.bf16.mxu1 %v3825_v15 }
 0x438   : > { %3828 = vmatpush3.bf16.msra.mxu1 %v3825_v15 }
 0x439   : > { %3830 = vmatprep.subr.bf16.mxu1 %v3829_v18 }
 0x43c   : > { %3832 = vmatpush3.bf16.msra.mxu1 %v3829_v18  ;;  %v2411_v18 = vpop.permute.xlu0 %2410 }
 0x43d   : > { %3834 = vmatprep.subr.bf16.mxu1 %v3833_v8 }
 0x440   : > { %3836 = vmatpush3.bf16.msra.mxu1 %v3833_v8  ;;  %v2612_v38 = vpop.permute.xlu0 %2611 }
 0x441   : > { %3838 = vmatprep.subr.bf16.mxu1 %v3837_v23 }
 0x444   : > { %3840 = vmatpush3.bf16.msra.mxu1 %v3837_v23 }
 0x447   : > { %3443 = vmatmul.mubr.f32.vlgmr.msra.gmra.mrb[10].mxu1 %v4244_v9  ;;  %v2212_v9 = vld [vmem:[%s4451_s7 + $0x8] sm:$0xff] }
 0x448   : > { %3449 = vmatprep.mubr.msk.f32.mxu1 %vm531_vm0, %v2853_v25  ;;  %2220 = vperm.xlu1 %3978, %v2212_v9  }
 0x44c   : > { %2405 = vperm.xlu1 %3978, %v2401_v35  }
 0x450   : > { %2606 = vperm.xlu1 %3978, %v2602_v39  }
 0x51a   : > { %v3444_v50 = vpop.f32.mrb[10].mxu1 }
 0x51b   : > { %v1938_v51 = vpop.f32.mrb[11].mxu1 }
 0x51c   : > { %v3841_v52 = vpack.c.bf16 %v3444_v50, %v1938_v51 }
 0x51e   : > { %3842 = vmatprep.subr.bf16.mxu1 %v3841_v52 }
 0x51f   : > { %3844 = vmatpush3.bf16.msra.mxu1 %v3841_v52 }
 0x520   : > { %3878 = vmatprep.subr.bf16.mxu1 %v4286_v24 }
 0x522   : > { %3450 = vmatmul.mubr.msk.f32.vlgmr.msra.gmra.mrb[4].mxu1 %vm531_vm0, %v2854_v53 }
 0x523   : > { %3880 = vmatpush3.bf16.msra.mxu1 %v4286_v24  ;;  %3491 = vmatprep.mubr.msk.f32.mxu1 %vm531_vm0, %v2857_v54  ;;  %v2216_v24 = vpop.permute.xlu1 %2215 }
 0x524   : > { %3913 = vmatprep.subr.bf16.mxu1 %v4049_v2 }
 0x527   : > { %v2221_v59 = vpop.permute.xlu1 %2220 }
 0x52a   : > { %3492 = vmatmul.mubr.msk.f32.vlgmr.msra.gmra.mrb[4].mxu1 %vm531_vm0, %v2858_v55 }
 0x52b   : > { %3533 = vmatprep.mubr.msk.f32.mxu1 %vm4050_vm1, %v4051_v3  ;;  %v2406_v20 = vpop.permute.xlu1 %2405 }
 0x52f   : > { %v2607_v40 = vpop.permute.xlu1 %2606 }
 0x5fd   : > { %v3493_v60 = vpop.f32.mrb[4].mxu1 }
 0x5fe   : > { %v2224_v61 = vadd.f32 %v3493_v60, %v2221_v59  ;;  %v2200_v62 = vpop.f32.mrb[5].mxu1 }
 0x5ff   : > { %v2223_v63 = vadd.f32 %v2216_v24, %v2200_v62 }
 0x600   : > { %v2226_v1 = vmax.f32 %v2224_v61, 0.0 }
 0x601   : > { %v2225_v0 = vmax.f32 %v2223_v63, 0.0 }
 0x603   : > { %3526 = vmatprep.mubr.f32.mxu0 %v2225_v0 }
 0x604   : > { %3527 = vmatmul.mubr.f32.vlgmr.msra.gmra.mrb[10].mxu0 %v2226_v1 }
 0x6d7   : > { %v3528_v4 = vpop.f32.mrb[10].mxu0 }
 0x6d8   : > { %v2309_v5 = vpop.f32.mrb[11].mxu0 }
 0x6d9   : > { %v3914_v6 = vpack.c.bf16 %v3528_v4, %v2309_v5 }
 0x6db   : > { %3915 = vmatpush3.bf16.msra.mxu1 %v3914_v6 }
 0x6de   : > { %3534 = vmatmul.mubr.msk.f32.vlgmr.msra.gmra.mrb[12].mxu1 %vm531_vm0, %v2318_v7 }
 0x6df   : > { %3538 = vmatprep.mubr.msk.f32.mxu1 %vm2413_vm2, %v2399_v10 }
 0x7b1   : > { %v2394_v12 = vpop.f32.mrb[12].mxu1 }
 0x7b2   : > { %v2395_v13 = vadd.f32 %v2394_v12, %v2323_v11  ;;  %v3535_v14 = vpop.f32.mrb[13].mxu1 }
 0x7b4   : > { %v2398_v15 = vmax.f32 %v2395_v13, 0.0 }
 0x7b6   : > { %3536 = vmatprep.subr.msk.mxu1 %vm2420_vm3, %v2398_v15 }
 0x7b7   : > { %3537 = vmatpush3.msk.msra.mxu1 %vm2420_vm3, %v2398_v15 }
 0x7b8   : > { %3539 = vmatmul.mubr.msk.f32.vlgmr.msra.gmra.mrb[14].mxu1 %vm2413_vm2, %v2400_v16  ;;  %3541 = vmatprep.subr.msk.mxu1 %vm2519_vm4, %v2511_v17 }
 0x7b9   : > { %3542 = vmatpush3.msk.msra.mxu1 %vm2519_vm4, %v2511_v17 }
 0x88b   : > { %v3540_v19 = vpop.f32.mrb[14].mxu1 }
 0x88c   : > { %v2496_v8 = vadd.f32 %v3540_v19, %v2411_v18  ;;  %v2490_v21 = vpop.f32.mrb[15].mxu1 }
 0x88d   : > { %v2491_v22 = vadd.f32 %v2490_v21, %v2406_v20 }
 0x88e   : > { %v2866_v23 = vmul.f32 -1.442695, %v2496_v8 }
 0x88f   : > { %v2865_v25 = vmul.f32 -1.442695, %v2491_v22 }
 0x890   : > { %3979 = vpow2.f32 %v2866_v23 }
 0x891   : > { %3981 = vpow2.f32 %v2865_v25 }
 0x89a   : > { %v3980_v26 = vpop.eup %3979 }
 0x89b   : > { %v3982_v27 = vpop.eup %3981  ;;  %v2506_v28 = vadd.f32 1.0, %v3980_v26 }
 0x89c   : > { %v2505_v9 = vadd.f32 1.0, %v3982_v27 }
 0x89e   : > { %3983 = vrcp.f32 %v2505_v9 }
 0x89f   : > { %3985 = vrcp.f32 %v2506_v28 }
 0x8a8   : > { %v3984_v29 = vpop.eup %3983 }
 0x8a9   : > { %v3986_v30 = vpop.eup %3985  ;;  %3543 = vmatprep.mubr.msk.f32.mxu1 %vm2512_vm5, %v3984_v29 }
 0x8aa   : > { %3544 = vmatmul.mubr.msk.f32.vlgmr.msra.gmra.mrb[16].mxu1 %vm2512_vm5, %v3986_v30 }
 0x8ab   : > { %3550 = vmatprep.mubr.msk.f32.mxu1 %vm531_vm0, %v2600_v31 }
 0x97d   : > { %v3545_v32 = vpop.f32.mrb[16].mxu1 }
 0x97e   : > { %v2599_v33 = vmul.f32 %v3545_v32, %v2226_v1  ;;  %v2589_v34 = vpop.f32.mrb[17].mxu1 }
 0x97f   : > { %v2598_v35 = vmul.f32 %v2589_v34, %v2225_v0 }
 0x981   : > { %v3916_v36 = vpack.c.bf16 %v2599_v33, %v2598_v35 }
 0x983   : > { %3917 = vmatprep.subr.bf16.mxu1 %v3916_v36 }
 0x984   : > { %3919 = vmatpush3.bf16.msra.mxu1 %v3916_v36 }
 0x987   : > { %3551 = vmatmul.mubr.msk.f32.vlgmr.msra.gmra.mrb[18].mxu1 %vm531_vm0, %v2601_v37 }
 0xa5a   : > { %v3552_v39 = vpop.f32.mrb[18].mxu1 }
 0xa5b   : > { %v2692_v41 = vadd.f32 %v3552_v39, %v2612_v38  ;;  %v2686_v42 = vpop.f32.mrb[19].mxu1 }
 0xa5c   : > { %v2687_v43 = vadd.f32 %v2686_v42, %v2607_v40  ;;  %2707 = sbr.rel (!%p4480_p9) target bundleno = 2667 (0xa6b), region = 122 }
 0xa5d   : > { %v2696_v45 = vadd.f32 %v3987_v44, %v2692_v41 }
 0xa5e   : > { %v2695_v47 = vadd.f32 %v3988_v46, %v2687_v43 }
 0xa5f   : > { %v2698_v48 = vmax.f32 %v2696_v45, 0.0 }
 0xa60   : > { %v2697_v49 = vmax.f32 %v2695_v47, 0.0 }
 0xa61   : > { %2700 = vst [vmem:[%s514_s27 + $0x8] sm:$0xff] %v2698_v48 }
 0xa62   : > { %2699 = vst [vmem:[%s514_s27] sm:$0xff] %v2697_v49 }
 0xa68   : > { %v2741_v51 = vld [vmem:[%s514_s27 + $0x8] sm:$0xff] }
 0xa69   : > { %v2739_v50 = vld [vmem:[%s514_s27] sm:$0xff]  ;;  %2742 = vst [vmem:[%s2709_s24 + $0x10] sm:$0xff] %v2741_v51 }
 0xa6a   : > { %2740 = vst [vmem:[%s2709_s24] sm:$0xff] %v2739_v50 }
 0xa6b PF: > { %s4482_s15 = sld [smem:[#allocation7_spill]]  ;;  %s4483_s25 = sld [smem:[#allocation8_spill]] }
 0xa6c   : > { %s4484_s29 = smov %s4039_s30 }
 0xa71   : > { %p22_p11 = scmp.ge.s32.totalorder %s4482_s15, 4   ;;  %s4485_s30 = smov %s4483_s25 }
 0xa73   :  { %24 = sbr.rel (!%p22_p11) target bundleno = 5 (0x5), region = 208 }
 0xa7a   :  { %2758 = vsyncpa [#allocation4], 1 }
 0xa7b   :  { %2760 = vsyncpa [#allocation4 + $0x1], 1 }

</bundles_post_ra>
